<compile_context>
chip_gen: v5e
topology: v5e:2x2
jax: 0.10.0
libtpu: 0.0.40
codegen_flags: <defaults>
</compile_context>

<pallas_src>
import functools
import math

import jax
import jax.numpy as jnp
from jax.experimental import pallas as pl
from jax.experimental.pallas import tpu as pltpu

COMPUTE_DTYPE = jnp.bfloat16  # MXU input dtype; all reductions/stats in f32.
VMEM_LIMIT = 48 * 1024 * 1024


# --------------------------------------------------------------------------
# helpers
# --------------------------------------------------------------------------
def _pick_tile(dim, target, align):
    """Largest multiple of `align` that divides `dim` and is <= target, else dim."""
    if dim <= target:
        return dim
    t = (target // align) * align
    while t >= align:
        if dim % t == 0:
            return t
        t -= align
    return dim


def _row_align(dtype):
    # bf16 packs 16 rows per sublane group; f32 packs 8.
    return 16 if jnp.dtype(dtype) == jnp.dtype(jnp.bfloat16) else 8


# --------------------------------------------------------------------------
# weight-resident linear:  act(x @ W + b)   [optionally fused residual + LN]
#   grid = (M // tm,); W block is (K, N) with a constant index_map, so it is
#   fetched into VMEM once and reused across all row tiles.
# --------------------------------------------------------------------------
def _linear_kernel(x_ref, w_ref, b_ref, o_ref, *, act):
    y = jnp.dot(x_ref[...], w_ref[...], preferred_element_type=jnp.float32)
    y = y + b_ref[...].astype(jnp.float32)
    if act == "gelu":
        # TODO(synk): HF BERT default gelu is the exact erf form; tanh
        # approximation used here (guaranteed Mosaic lowering), tiny delta.
        y = jax.nn.gelu(y, approximate=True)
    elif act == "tanh":
        y = jnp.tanh(y)
    o_ref[...] = y.astype(o_ref.dtype)


def _linear_res_ln_kernel(x_ref, w_ref, b_ref, r_ref, g_ref, bb_ref, o_ref, *, eps):
    # matmul + bias + residual + layernorm fused in one epilogue (N == H here).
    y = jnp.dot(x_ref[...], w_ref[...], preferred_element_type=jnp.float32)
    y = y + b_ref[...].astype(jnp.float32) + r_ref[...].astype(jnp.float32)
    mu = jnp.mean(y, axis=-1, keepdims=True)
    var = jnp.mean(jnp.square(y - mu), axis=-1, keepdims=True)
    yhat = (y - mu) * jax.lax.rsqrt(var + eps)
    o_ref[...] = (yhat * g_ref[...].astype(jnp.float32)
                  + bb_ref[...].astype(jnp.float32)).astype(o_ref.dtype)


def linear(x, w, b, act=None, out_dtype=None, *, residual=None,
           ln_gamma=None, ln_beta=None, ln_eps=1e-12, tm=512):
    M, K = x.shape
    Kw, N = w.shape
    assert K == Kw
    out_dtype = out_dtype or x.dtype
    # tm=512 keeps the per-program VMEM footprint (x tile + resident weight +
    # double-buffered output + f32 intermediate) comfortably under 48 MiB even
    # on v7x (64 MiB physical); v5e/v6e could go larger but 512 is near the
    # compute-bound knee already.
    tm = _pick_tile(M, tm, _row_align(x.dtype))
    b2 = b.reshape(1, N).astype(jnp.float32)

    x_spec = pl.BlockSpec((tm, K), lambda i: (i, 0))
    w_spec = pl.BlockSpec((K, N), lambda i: (0, 0))   # constant index -> fetched once
    vec_spec = pl.BlockSpec((1, N), lambda i: (0, 0))
    row_out_spec = pl.BlockSpec((tm, N), lambda i: (i, 0))

    flops = 2 * M * N * K
    trans = M * N if act in ("gelu", "tanh") else 0
    bytes_accessed = (M * K * jnp.dtype(x.dtype).itemsize
                      + K * N * jnp.dtype(w.dtype).itemsize
                      + M * N * jnp.dtype(out_dtype).itemsize)

    if residual is None:
        kernel = functools.partial(_linear_kernel, act=act)
        in_specs = [x_spec, w_spec, vec_spec]
        args = (x, w, b2)
    else:
        assert act is None and residual.shape == (M, N)
        kernel = functools.partial(_linear_res_ln_kernel, eps=ln_eps)
        res_spec = pl.BlockSpec((tm, N), lambda i: (i, 0))
        in_specs = [x_spec, w_spec, vec_spec, res_spec, vec_spec, vec_spec]
        args = (x, w, b2, residual,
                ln_gamma.reshape(1, N), ln_beta.reshape(1, N))
        bytes_accessed += M * N * jnp.dtype(residual.dtype).itemsize

    cost = pl.CostEstimate(flops=flops, transcendentals=trans,
                           bytes_accessed=bytes_accessed)

    return pl.pallas_call(
        kernel,
        grid=(M // tm,),
        in_specs=in_specs,
        out_specs=row_out_spec,
        out_shape=jax.ShapeDtypeStruct((M, N), out_dtype),
        compiler_params=pltpu.CompilerParams(
            dimension_semantics=("parallel",),
            vmem_limit_bytes=VMEM_LIMIT,
        ),
        cost_estimate=cost,
    )(*args)


# --------------------------------------------------------------------------
# standalone layernorm (embedding path only), tiled over rows
# --------------------------------------------------------------------------
def _ln_kernel(x_ref, g_ref, b_ref, o_ref, *, eps):
    x = x_ref[...].astype(jnp.float32)
    mu = jnp.mean(x, axis=-1, keepdims=True)
    var = jnp.mean(jnp.square(x - mu), axis=-1, keepdims=True)
    y = (x - mu) * jax.lax.rsqrt(var + eps)
    o_ref[...] = (y * g_ref[...].astype(jnp.float32)
                  + b_ref[...].astype(jnp.float32)).astype(o_ref.dtype)


def layernorm(x, gamma, beta, eps=1e-12, out_dtype=None, *, tm=512):
    M, H = x.shape
    out_dtype = out_dtype or x.dtype
    tm = _pick_tile(M, tm, _row_align(x.dtype))
    row_spec = pl.BlockSpec((tm, H), lambda i: (i, 0))
    vec_spec = pl.BlockSpec((1, H), lambda i: (0, 0))
    return pl.pallas_call(
        functools.partial(_ln_kernel, eps=eps),
        grid=(M // tm,),
        in_specs=[row_spec, vec_spec, vec_spec],
        out_specs=row_spec,
        out_shape=jax.ShapeDtypeStruct((M, H), out_dtype),
        compiler_params=pltpu.CompilerParams(
            dimension_semantics=("parallel",),
            vmem_limit_bytes=VMEM_LIMIT,
        ),
    )(x, gamma.reshape(1, H), beta.reshape(1, H))


# --------------------------------------------------------------------------
# multi-head self-attention, tiled over (batch, query rows).
# Input is the fused (B*S, 3H) QKV slab. The full (S, 3H) block per batch
# element is resident in VMEM (constant index along the query-tile axis);
# Q rows are sliced with pl.ds, heads split via static column slices, and each
# head's context is stored straight into its lane slice of the output block.
# The 1/sqrt(dh) scale is already folded into Wq at parameter-init time.
# --------------------------------------------------------------------------
def _attention_kernel(qkv_ref, m_ref, o_ref, *, num_heads, hidden, seq, tq):
    H = hidden
    dh = H // num_heads
    q_off = pl.multiple_of(pl.program_id(1) * tq, tq)

    # additive mask, broadcast once (hoisted out of the per-head loop)
    mask2d = jnp.broadcast_to(m_ref[...][0].astype(jnp.float32), (tq, seq))

    for h in range(num_heads):
        q = qkv_ref[pl.ds(q_off, tq), pl.ds(h * dh, dh)]          # (tq, dh)
        k = qkv_ref[:, pl.ds(H + h * dh, dh)]                      # (S,  dh)
        v = qkv_ref[:, pl.ds(2 * H + h * dh, dh)]                  # (S,  dh)

        # QK^T via dot_general contracting on dh -> no explicit K transpose
        s = jax.lax.dot_general(q, k, (((1,), (1,)), ((), ())),
                                preferred_element_type=jnp.float32)  # (tq, S)
        s = s + mask2d
        s = s - jnp.max(s, axis=-1, keepdims=True)
        p = jnp.exp(s)
        inv_l = pl.reciprocal(jnp.sum(p, axis=-1, keepdims=True), approx=True)
        ctx = jnp.dot(p.astype(v.dtype), v,
                      preferred_element_type=jnp.float32)            # (tq, dh)
        o_ref[:, pl.ds(h * dh, dh)] = (ctx * inv_l).astype(o_ref.dtype)
    # TODO(synk): for production shapes (dh=64 on 256-wide MXU parts) switch to
    # a flash-style KV loop with >=256-row K/V tiles and batched heads to
    # recover MXU width; the per-head loop here under-uses the MXU on v6e/v7x.


def attention(qkv, add_mask, *, batch, seq, hidden, num_heads, tq=256):
    tq = _pick_tile(seq, tq, _row_align(qkv.dtype))
    nq = seq // tq
    return pl.pallas_call(
        functools.partial(_attention_kernel, num_heads=num_heads,
                          hidden=hidden, seq=seq, tq=tq),
        grid=(batch, nq),
        in_specs=[
            pl.BlockSpec((seq, 3 * hidden), lambda b, qi: (b, 0)),
            pl.BlockSpec((1, 1, seq), lambda b, qi: (b, 0, 0)),
        ],
        out_specs=pl.BlockSpec((tq, hidden), lambda b, qi: (b * nq + qi, 0)),
        out_shape=jax.ShapeDtypeStruct((batch * seq, hidden), qkv.dtype),
        compiler_params=pltpu.CompilerParams(
            dimension_semantics=("parallel", "parallel"),
            vmem_limit_bytes=VMEM_LIMIT,
        ),
    )(qkv, add_mask)


# --------------------------------------------------------------------------
# Parameter initialization (deterministic, synthetic)
# --------------------------------------------------------------------------
def _dense(key, din, dout):
    return {
        "w": (0.02 * jax.random.normal(key, (din, dout), jnp.float32)
              ).astype(COMPUTE_DTYPE),
        "b": jnp.zeros((dout,), jnp.float32),
    }


def _ln_params(h):
    return {"g": jnp.ones((h,), jnp.float32), "b": jnp.zeros((h,), jnp.float32)}


def init_params(key, *, vocab, hidden, heads, inter, layers, labels,
                max_pos, type_vocab):
    dh = hidden // heads
    q_scale = 1.0 / math.sqrt(dh)
    keys = iter(jax.random.split(key, 16 + 8 * layers))
    params = {
        "word_emb": 0.02 * jax.random.normal(next(keys), (vocab, hidden), jnp.float32),
        "pos_emb": 0.02 * jax.random.normal(next(keys), (max_pos, hidden), jnp.float32),
        "type_emb": 0.02 * jax.random.normal(next(keys), (type_vocab, hidden), jnp.float32),
        "emb_ln": _ln_params(hidden),
        "layers": [],
        "pooler": _dense(next(keys), hidden, hidden),
        "classifier": _dense(next(keys), hidden, labels),
    }
    for _ in range(layers):
        qkv = _dense(next(keys), hidden, 3 * hidden)   # fused [Wq|Wk|Wv]
        # Fold the softmax 1/sqrt(dh) scale into the Q projection (weight+bias);
        # the attention kernel then skips the SxS score scaling entirely.
        wq = (qkv["w"][:, :hidden].astype(jnp.float32) * q_scale).astype(COMPUTE_DTYPE)
        qkv["w"] = jnp.concatenate([wq, qkv["w"][:, hidden:]], axis=1)
        qkv["b"] = qkv["b"].at[:hidden].multiply(q_scale)
        params["layers"].append({
            "qkv": qkv,
            "o": _dense(next(keys), hidden, hidden),
            "attn_ln": _ln_params(hidden),
            "ff1": _dense(next(keys), hidden, inter),
            "ff2": _dense(next(keys), inter, hidden),
            "ffn_ln": _ln_params(hidden),
        })
    return params


# --------------------------------------------------------------------------
# Forward pass (BertModel -> pooled output -> dropout(identity) -> classifier)
# --------------------------------------------------------------------------
def bert_classifier_forward(params, input_ids, attention_mask, token_type_ids,
                            *, num_heads):
    B, S = input_ids.shape
    H = params["word_emb"].shape[1]

    # ----- embeddings (glue: gathers) -----
    emb = (jnp.take(params["word_emb"], input_ids, axis=0)
           + params["pos_emb"][None, :S, :]
           + jnp.take(params["type_emb"], token_type_ids, axis=0))
    x2d = layernorm(emb.reshape(B * S, H), params["emb_ln"]["g"],
                    params["emb_ln"]["b"], out_dtype=COMPUTE_DTYPE)

    # additive attention mask, built once (loop invariant): (B, 1, S)
    add_mask = ((1.0 - attention_mask.astype(jnp.float32)) * -10000.0
                ).reshape(B, 1, S)

    # ----- transformer encoder layers -----
    for lp in params["layers"]:
        qkv = linear(x2d, lp["qkv"]["w"], lp["qkv"]["b"])          # (B*S, 3H)
        ctx = attention(qkv, add_mask, batch=B, seq=S, hidden=H,
                        num_heads=num_heads)                        # (B*S, H)
        # attention output projection with residual + layernorm fused in
        x2d = linear(ctx, lp["o"]["w"], lp["o"]["b"],
                     residual=x2d,
                     ln_gamma=lp["attn_ln"]["g"], ln_beta=lp["attn_ln"]["b"])

        h = linear(x2d, lp["ff1"]["w"], lp["ff1"]["b"], act="gelu")
        # FF2 with residual + layernorm fused in
        x2d = linear(h, lp["ff2"]["w"], lp["ff2"]["b"],
                     residual=x2d,
                     ln_gamma=lp["ffn_ln"]["g"], ln_beta=lp["ffn_ln"]["b"])

    # ----- pooler: tanh(W * hidden[CLS] + b) -----
    cls = x2d.reshape(B, S, H)[:, 0, :]
    pooled = linear(cls, params["pooler"]["w"], params["pooler"]["b"], act="tanh")

    # dropout(hidden_dropout_prob) is the identity at inference time
    logits = linear(pooled, params["classifier"]["w"], params["classifier"]["b"],
                    out_dtype=jnp.float32)
    # TODO(synk): CrossEntropyLoss branch (labels is not None) not implemented;
    # the labels=None path of the PyTorch module returns logits only.
    return logits


# --------------------------------------------------------------------------
if __name__ == "__main__":
    # small config consistent with the module's __init__ (hidden_size, num_labels, ...)
    B, S = 2, 8
    HIDDEN, HEADS, INTER, LAYERS = 32, 2, 64, 2
    VOCAB, MAX_POS, TYPE_VOCAB, NUM_LABELS = 100, 32, 2, 3

    root = jax.random.PRNGKey(0)
    k_params, k_ids = jax.random.split(root)

    params = init_params(k_params, vocab=VOCAB, hidden=HIDDEN, heads=HEADS,
                         inter=INTER, layers=LAYERS, labels=NUM_LABELS,
                         max_pos=MAX_POS, type_vocab=TYPE_VOCAB)

    input_ids = jax.random.randint(k_ids, (B, S), 0, VOCAB, dtype=jnp.int32)
    attention_mask = jnp.ones((B, S), jnp.float32)
    token_type_ids = jnp.zeros((B, S), jnp.int32)

    fwd = jax.jit(functools.partial(bert_classifier_forward, num_heads=HEADS))
    logits = fwd(params, input_ids, attention_mask, token_type_ids)
    jax.block_until_ready(logits)
    assert logits.shape == (B, NUM_LABELS)
    print("KERNEL_OK")
</pallas_src>

<mosaic_0001>
module attributes {stable_mosaic.version = 11 : i64} {
  func.func @_ln_kernel(%arg0: i32, %arg1: memref<16x32xf32, #tpu.memory_space<vmem>>, %arg2: memref<1x32xf32, #tpu.memory_space<vmem>>, %arg3: memref<1x32xf32, #tpu.memory_space<vmem>>, %arg4: memref<16x32xbf16, #tpu.memory_space<vmem>>) attributes {dimension_semantics = [#tpu.dimension_semantics<parallel>], iteration_bounds = array<i64: 1>, scalar_prefetch = 0 : i64, scratch_operands = 0 : i64, tpu.core_type = #tpu.core_type<tc>, window_params = [{transform_indices = @transform_0, window_bounds = array<i64: 16, 32>}, {pipeline_mode = #tpu.pipeline_mode<synchronous>, transform_indices = @transform_1, window_bounds = array<i64: 1, 32>}, {pipeline_mode = #tpu.pipeline_mode<synchronous>, transform_indices = @transform_2, window_bounds = array<i64: 1, 32>}, {transform_indices = @transform_3, window_bounds = array<i64: 16, 32>}]} {
    %c0 = arith.constant 0 : index
    %c0_0 = arith.constant 0 : index
    %0 = vector.load %arg1[%c0, %c0_0] : memref<16x32xf32, #tpu.memory_space<vmem>>, vector<16x32xf32>
    %cst = arith.constant dense<0.000000e+00> : vector<16xf32>
    %1 = vector.multi_reduction <add>, %0, %cst [1] : vector<16x32xf32> to vector<16xf32>
    %2 = vector.shape_cast %1 : vector<16xf32> to vector<16x1xf32>
    %cst_1 = arith.constant 3.200000e+01 : f32
    %3 = vector.broadcast %cst_1 : f32 to vector<16x1xf32>
    %4 = arith.divf %2, %3 : vector<16x1xf32>
    %5 = vector.broadcast %4 : vector<16x1xf32> to vector<16x32xf32>
    %6 = arith.subf %0, %5 : vector<16x32xf32>
    %7 = arith.mulf %6, %6 : vector<16x32xf32>
    %cst_2 = arith.constant dense<0.000000e+00> : vector<16xf32>
    %8 = vector.multi_reduction <add>, %7, %cst_2 [1] : vector<16x32xf32> to vector<16xf32>
    %9 = vector.shape_cast %8 : vector<16xf32> to vector<16x1xf32>
    %cst_3 = arith.constant 3.200000e+01 : f32
    %10 = vector.broadcast %cst_3 : f32 to vector<16x1xf32>
    %11 = arith.divf %9, %10 : vector<16x1xf32>
    %12 = vector.broadcast %4 : vector<16x1xf32> to vector<16x32xf32>
    %13 = arith.subf %0, %12 : vector<16x32xf32>
    %cst_4 = arith.constant 9.99999996E-13 : f32
    %14 = vector.broadcast %cst_4 : f32 to vector<16x1xf32>
    %15 = arith.addf %11, %14 : vector<16x1xf32>
    %16 = math.rsqrt %15 : vector<16x1xf32>
    %17 = vector.broadcast %16 : vector<16x1xf32> to vector<16x32xf32>
    %18 = arith.mulf %13, %17 : vector<16x32xf32>
    %c0_5 = arith.constant 0 : index
    %c0_6 = arith.constant 0 : index
    %19 = vector.load %arg2[%c0_5, %c0_6] : memref<1x32xf32, #tpu.memory_space<vmem>>, vector<1x32xf32>
    %20 = vector.broadcast %19 : vector<1x32xf32> to vector<16x32xf32>
    %21 = arith.mulf %18, %20 : vector<16x32xf32>
    %c0_7 = arith.constant 0 : index
    %c0_8 = arith.constant 0 : index
    %22 = vector.load %arg3[%c0_7, %c0_8] : memref<1x32xf32, #tpu.memory_space<vmem>>, vector<1x32xf32>
    %23 = vector.broadcast %22 : vector<1x32xf32> to vector<16x32xf32>
    %24 = arith.addf %21, %23 : vector<16x32xf32>
    %25 = arith.truncf %24 : vector<16x32xf32> to vector<16x32xbf16>
    %c0_9 = arith.constant 0 : index
    %c0_10 = arith.constant 0 : index
    %26 = vector.load %arg4[%c0_9, %c0_10] : memref<16x32xbf16, #tpu.memory_space<vmem>>, vector<16x32xbf16>
    tpu.vector_store %arg4[%c0_9, %c0_10], %25 {strides = array<i32>} : memref<16x32xbf16, #tpu.memory_space<vmem>>, vector<16x32xbf16>,
    return
  }
  func.func @transform_0(%arg0: i32) -> (i32, i32) {
    %c0_i32 = arith.constant 0 : i32
    %c0_i32_0 = arith.constant 0 : i32
    return %arg0, %c0_i32 : i32, i32
  }
  func.func @transform_1(%arg0: i32) -> (i32, i32) {
    %c0_i32 = arith.constant 0 : i32
    %c0_i32_0 = arith.constant 0 : i32
    %c0_i32_1 = arith.constant 0 : i32
    return %c0_i32, %c0_i32_0 : i32, i32
  }
  func.func @transform_2(%arg0: i32) -> (i32, i32) {
    %c0_i32 = arith.constant 0 : i32
    %c0_i32_0 = arith.constant 0 : i32
    %c0_i32_1 = arith.constant 0 : i32
    return %c0_i32, %c0_i32_0 : i32, i32
  }
  func.func @transform_3(%arg0: i32) -> (i32, i32) {
    %c0_i32 = arith.constant 0 : i32
    %c0_i32_0 = arith.constant 0 : i32
    return %arg0, %c0_i32 : i32, i32
  }
}

module attributes {stable_mosaic.version = 11 : i64} {
  func.func @_attention_kernel(%arg0: i32, %arg1: i32, %arg2: memref<8x96xbf16, #tpu.memory_space<vmem>>, %arg3: memref<1x1x8xf32, #tpu.memory_space<vmem>>, %arg4: memref<8x32xbf16, #tpu.memory_space<vmem>>) attributes {dimension_semantics = [#tpu.dimension_semantics<parallel>, #tpu.dimension_semantics<parallel>], iteration_bounds = array<i64: 2, 1>, scalar_prefetch = 0 : i64, scratch_operands = 0 : i64, tpu.core_type = #tpu.core_type<tc>, window_params = [{transform_indices = @transform_0, window_bounds = array<i64: 8, 96>}, {transform_indices = @transform_1, window_bounds = array<i64: 1, 1, 8>}, {transform_indices = @transform_2, window_bounds = array<i64: 8, 32>}]} {
    %c8_i32 = arith.constant 8 : i32
    %0 = arith.muli %arg1, %c8_i32 : i32
    %1 = tpu.assume_multiple %0, 8 : i32
    %c0 = arith.constant 0 : index
    %c0_0 = arith.constant 0 : index
    %c0_1 = arith.constant 0 : index
    %2 = vector.load %arg3[%c0, %c0_0, %c0_1] : memref<1x1x8xf32, #tpu.memory_space<vmem>>, vector<1x1x8xf32>
    %3 = vector.shape_cast %2 : vector<1x1x8xf32> to vector<1x8xf32>
    %4 = vector.shape_cast %3 : vector<1x8xf32> to vector<1x8xf32>
    %5 = vector.broadcast %4 : vector<1x8xf32> to vector<8x8xf32>
    %6 = arith.index_cast %1 : i32 to index
    %c0_2 = arith.constant 0 : index
    %7 = vector.load %arg2[%6, %c0_2] : memref<8x96xbf16, #tpu.memory_space<vmem>>, vector<8x16xbf16>
    %c0_3 = arith.constant 0 : index
    %c32 = arith.constant 32 : index
    %8 = vector.load %arg2[%c0_3, %c32] : memref<8x96xbf16, #tpu.memory_space<vmem>>, vector<8x16xbf16>
    %c0_4 = arith.constant 0 : index
    %c64 = arith.constant 64 : index
    %9 = vector.load %arg2[%c0_4, %c64] : memref<8x96xbf16, #tpu.memory_space<vmem>>, vector<8x16xbf16>
    %cst = arith.constant dense<0.000000e+00> : vector<8x8xf32>
    %10 = tpu.matmul %7, %8, %cst {dimension_numbers = #tpu.dot_dimension_numbers<[1], [1], [0], [0], [0, 0, 1, 0], [], []>} : vector<8x16xbf16>, vector<8x16xbf16>, vector<8x8xf32> -> vector<8x8xf32>
    %11 = arith.addf %10, %5 : vector<8x8xf32>
    %cst_5 = arith.constant dense<0xFF800000> : vector<8xf32>
    %12 = vector.multi_reduction <maximumf>, %11, %cst_5 [1] : vector<8x8xf32> to vector<8xf32>
    %13 = vector.shape_cast %12 : vector<8xf32> to vector<8x1xf32>
    %14 = vector.broadcast %13 : vector<8x1xf32> to vector<8x8xf32>
    %15 = arith.subf %11, %14 : vector<8x8xf32>
    %16 = math.exp %15 : vector<8x8xf32>
    %cst_6 = arith.constant dense<0.000000e+00> : vector<8xf32>
    %17 = vector.multi_reduction <add>, %16, %cst_6 [1] : vector<8x8xf32> to vector<8xf32>
    %18 = vector.shape_cast %17 : vector<8xf32> to vector<8x1xf32>
    %19 = tpu.reciprocal %18 {approx = true} : vector<8x1xf32> -> vector<8x1xf32>
    %20 = arith.truncf %16 : vector<8x8xf32> to vector<8x8xbf16>
    %cst_7 = arith.constant dense<0.000000e+00> : vector<8x16xf32>
    %21 = tpu.matmul %20, %9, %cst_7 {dimension_numbers = #tpu.dot_dimension_numbers<[1], [0], [0], [1], [0, 0, 1, 1], [], []>} : vector<8x8xbf16>, vector<8x16xbf16>, vector<8x16xf32> -> vector<8x16xf32>
    %22 = vector.broadcast %19 : vector<8x1xf32> to vector<8x16xf32>
    %23 = arith.mulf %21, %22 : vector<8x16xf32>
    %24 = arith.truncf %23 : vector<8x16xf32> to vector<8x16xbf16>
    %c0_8 = arith.constant 0 : index
    %c0_9 = arith.constant 0 : index
    %25 = vector.load %arg4[%c0_8, %c0_9] : memref<8x32xbf16, #tpu.memory_space<vmem>>, vector<8x16xbf16>
    tpu.vector_store %arg4[%c0_8, %c0_9], %24 {strides = array<i32>} : memref<8x32xbf16, #tpu.memory_space<vmem>>, vector<8x16xbf16>,
    %26 = arith.index_cast %1 : i32 to index
    %c16 = arith.constant 16 : index
    %27 = vector.load %arg2[%26, %c16] : memref<8x96xbf16, #tpu.memory_space<vmem>>, vector<8x16xbf16>
    %c0_10 = arith.constant 0 : index
    %c48 = arith.constant 48 : index
    %28 = vector.load %arg2[%c0_10, %c48] : memref<8x96xbf16, #tpu.memory_space<vmem>>, vector<8x16xbf16>
    %c0_11 = arith.constant 0 : index
    %c80 = arith.constant 80 : index
    %29 = vector.load %arg2[%c0_11, %c80] : memref<8x96xbf16, #tpu.memory_space<vmem>>, vector<8x16xbf16>
    %cst_12 = arith.constant dense<0.000000e+00> : vector<8x8xf32>
    %30 = tpu.matmul %27, %28, %cst_12 {dimension_numbers = #tpu.dot_dimension_numbers<[1], [1], [0], [0], [0, 0, 1, 0], [], []>} : vector<8x16xbf16>, vector<8x16xbf16>, vector<8x8xf32> -> vector<8x8xf32>
    %31 = arith.addf %30, %5 : vector<8x8xf32>
    %cst_13 = arith.constant dense<0xFF800000> : vector<8xf32>
    %32 = vector.multi_reduction <maximumf>, %31, %cst_13 [1] : vector<8x8xf32> to vector<8xf32>
    %33 = vector.shape_cast %32 : vector<8xf32> to vector<8x1xf32>
    %34 = vector.broadcast %33 : vector<8x1xf32> to vector<8x8xf32>
    %35 = arith.subf %31, %34 : vector<8x8xf32>
    %36 = math.exp %35 : vector<8x8xf32>
    %cst_14 = arith.constant dense<0.000000e+00> : vector<8xf32>
    %37 = vector.multi_reduction <add>, %36, %cst_14 [1] : vector<8x8xf32> to vector<8xf32>
    %38 = vector.shape_cast %37 : vector<8xf32> to vector<8x1xf32>
    %39 = tpu.reciprocal %38 {approx = true} : vector<8x1xf32> -> vector<8x1xf32>
    %40 = arith.truncf %36 : vector<8x8xf32> to vector<8x8xbf16>
    %cst_15 = arith.constant dense<0.000000e+00> : vector<8x16xf32>
    %41 = tpu.matmul %40, %29, %cst_15 {dimension_numbers = #tpu.dot_dimension_numbers<[1], [0], [0], [1], [0, 0, 1, 1], [], []>} : vector<8x8xbf16>, vector<8x16xbf16>, vector<8x16xf32> -> vector<8x16xf32>
    %42 = vector.broadcast %39 : vector<8x1xf32> to vector<8x16xf32>
    %43 = arith.mulf %41, %42 : vector<8x16xf32>
    %44 = arith.truncf %43 : vector<8x16xf32> to vector<8x16xbf16>
    %c0_16 = arith.constant 0 : index
    %c16_17 = arith.constant 16 : index
    %45 = vector.load %arg4[%c0_16, %c16_17] : memref<8x32xbf16, #tpu.memory_space<vmem>>, vector<8x16xbf16>
    tpu.vector_store %arg4[%c0_16, %c16_17], %44 {strides = array<i32>} : memref<8x32xbf16, #tpu.memory_space<vmem>>, vector<8x16xbf16>,
    return
  }
  func.func @transform_0(%arg0: i32, %arg1: i32) -> (i32, i32) {
    %c0_i32 = arith.constant 0 : i32
    %c0_i32_0 = arith.constant 0 : i32
    return %arg0, %c0_i32 : i32, i32
  }
  func.func @transform_1(%arg0: i32, %arg1: i32) -> (i32, i32, i32) {
    %c0_i32 = arith.constant 0 : i32
    %c0_i32_0 = arith.constant 0 : i32
    %c0_i32_1 = arith.constant 0 : i32
    return %arg0, %c0_i32, %c0_i32_0 : i32, i32, i32
  }
  func.func @transform_2(%arg0: i32, %arg1: i32) -> (i32, i32) {
    %c1_i32 = arith.constant 1 : i32
    %0 = arith.muli %arg0, %c1_i32 : i32
    %1 = arith.addi %0, %arg1 : i32
    %c0_i32 = arith.constant 0 : i32
    %c0_i32_0 = arith.constant 0 : i32
    return %1, %c0_i32 : i32, i32
  }
}

module attributes {stable_mosaic.version = 11 : i64} {
  func.func @_linear_kernel(%arg0: i32, %arg1: memref<16x32xbf16, #tpu.memory_space<vmem>>, %arg2: memref<32x96xbf16, #tpu.memory_space<vmem>>, %arg3: memref<1x96xf32, #tpu.memory_space<vmem>>, %arg4: memref<16x96xbf16, #tpu.memory_space<vmem>>) attributes {dimension_semantics = [#tpu.dimension_semantics<parallel>], iteration_bounds = array<i64: 1>, scalar_prefetch = 0 : i64, scratch_operands = 0 : i64, tpu.core_type = #tpu.core_type<tc>, window_params = [{transform_indices = @transform_0, window_bounds = array<i64: 16, 32>}, {pipeline_mode = #tpu.pipeline_mode<synchronous>, transform_indices = @transform_1, window_bounds = array<i64: 32, 96>}, {pipeline_mode = #tpu.pipeline_mode<synchronous>, transform_indices = @transform_2, window_bounds = array<i64: 1, 96>}, {transform_indices = @transform_3, window_bounds = array<i64: 16, 96>}]} {
    %c0 = arith.constant 0 : index
    %c0_0 = arith.constant 0 : index
    %0 = vector.load %arg1[%c0, %c0_0] : memref<16x32xbf16, #tpu.memory_space<vmem>>, vector<16x32xbf16>
    %c0_1 = arith.constant 0 : index
    %c0_2 = arith.constant 0 : index
    %1 = vector.load %arg2[%c0_1, %c0_2] : memref<32x96xbf16, #tpu.memory_space<vmem>>, vector<32x96xbf16>
    %cst = arith.constant dense<0.000000e+00> : vector<16x96xf32>
    %2 = tpu.matmul %0, %1, %cst {dimension_numbers = #tpu.dot_dimension_numbers<[1], [0], [0], [1], [0, 0, 1, 1], [], []>} : vector<16x32xbf16>, vector<32x96xbf16>, vector<16x96xf32> -> vector<16x96xf32>
    %c0_3 = arith.constant 0 : index
    %c0_4 = arith.constant 0 : index
    %3 = vector.load %arg3[%c0_3, %c0_4] : memref<1x96xf32, #tpu.memory_space<vmem>>, vector<1x96xf32>
    %4 = vector.broadcast %3 : vector<1x96xf32> to vector<16x96xf32>
    %5 = arith.addf %2, %4 : vector<16x96xf32>
    %6 = arith.truncf %5 : vector<16x96xf32> to vector<16x96xbf16>
    %c0_5 = arith.constant 0 : index
    %c0_6 = arith.constant 0 : index
    %7 = vector.load %arg4[%c0_5, %c0_6] : memref<16x96xbf16, #tpu.memory_space<vmem>>, vector<16x96xbf16>
    tpu.vector_store %arg4[%c0_5, %c0_6], %6 {strides = array<i32>} : memref<16x96xbf16, #tpu.memory_space<vmem>>, vector<16x96xbf16>,
    return
  }
  func.func @transform_0(%arg0: i32) -> (i32, i32) {
    %c0_i32 = arith.constant 0 : i32
    %c0_i32_0 = arith.constant 0 : i32
    return %arg0, %c0_i32 : i32, i32
  }
  func.func @transform_1(%arg0: i32) -> (i32, i32) {
    %c0_i32 = arith.constant 0 : i32
    %c0_i32_0 = arith.constant 0 : i32
    %c0_i32_1 = arith.constant 0 : i32
    return %c0_i32, %c0_i32_0 : i32, i32
  }
  func.func @transform_2(%arg0: i32) -> (i32, i32) {
    %c0_i32 = arith.constant 0 : i32
    %c0_i32_0 = arith.constant 0 : i32
    %c0_i32_1 = arith.constant 0 : i32
    return %c0_i32, %c0_i32_0 : i32, i32
  }
  func.func @transform_3(%arg0: i32) -> (i32, i32) {
    %c0_i32 = arith.constant 0 : i32
    %c0_i32_0 = arith.constant 0 : i32
    return %arg0, %c0_i32 : i32, i32
  }
}

module attributes {stable_mosaic.version = 11 : i64} {
  func.func @_linear_res_ln_kernel(%arg0: i32, %arg1: memref<16x32xbf16, #tpu.memory_space<vmem>>, %arg2: memref<32x32xbf16, #tpu.memory_space<vmem>>, %arg3: memref<1x32xf32, #tpu.memory_space<vmem>>, %arg4: memref<16x32xbf16, #tpu.memory_space<vmem>>, %arg5: memref<1x32xf32, #tpu.memory_space<vmem>>, %arg6: memref<1x32xf32, #tpu.memory_space<vmem>>, %arg7: memref<16x32xbf16, #tpu.memory_space<vmem>>) attributes {dimension_semantics = [#tpu.dimension_semantics<parallel>], iteration_bounds = array<i64: 1>, scalar_prefetch = 0 : i64, scratch_operands = 0 : i64, tpu.core_type = #tpu.core_type<tc>, window_params = [{transform_indices = @transform_0, window_bounds = array<i64: 16, 32>}, {pipeline_mode = #tpu.pipeline_mode<synchronous>, transform_indices = @transform_1, window_bounds = array<i64: 32, 32>}, {pipeline_mode = #tpu.pipeline_mode<synchronous>, transform_indices = @transform_2, window_bounds = array<i64: 1, 32>}, {transform_indices = @transform_3, window_bounds = array<i64: 16, 32>}, {pipeline_mode = #tpu.pipeline_mode<synchronous>, transform_indices = @transform_4, window_bounds = array<i64: 1, 32>}, {pipeline_mode = #tpu.pipeline_mode<synchronous>, transform_indices = @transform_5, window_bounds = array<i64: 1, 32>}, {transform_indices = @transform_6, window_bounds = array<i64: 16, 32>}]} {
    %c0 = arith.constant 0 : index
    %c0_0 = arith.constant 0 : index
    %0 = vector.load %arg1[%c0, %c0_0] : memref<16x32xbf16, #tpu.memory_space<vmem>>, vector<16x32xbf16>
    %c0_1 = arith.constant 0 : index
    %c0_2 = arith.constant 0 : index
    %1 = vector.load %arg2[%c0_1, %c0_2] : memref<32x32xbf16, #tpu.memory_space<vmem>>, vector<32x32xbf16>
    %cst = arith.constant dense<0.000000e+00> : vector<16x32xf32>
    %2 = tpu.matmul %0, %1, %cst {dimension_numbers = #tpu.dot_dimension_numbers<[1], [0], [0], [1], [0, 0, 1, 1], [], []>} : vector<16x32xbf16>, vector<32x32xbf16>, vector<16x32xf32> -> vector<16x32xf32>
    %c0_3 = arith.constant 0 : index
    %c0_4 = arith.constant 0 : index
    %3 = vector.load %arg3[%c0_3, %c0_4] : memref<1x32xf32, #tpu.memory_space<vmem>>, vector<1x32xf32>
    %4 = vector.broadcast %3 : vector<1x32xf32> to vector<16x32xf32>
    %5 = arith.addf %2, %4 : vector<16x32xf32>
    %c0_5 = arith.constant 0 : index
    %c0_6 = arith.constant 0 : index
    %6 = vector.load %arg4[%c0_5, %c0_6] : memref<16x32xbf16, #tpu.memory_space<vmem>>, vector<16x32xbf16>
    %7 = arith.extf %6 : vector<16x32xbf16> to vector<16x32xf32>
    %8 = arith.addf %5, %7 : vector<16x32xf32>
    %cst_7 = arith.constant dense<0.000000e+00> : vector<16xf32>
    %9 = vector.multi_reduction <add>, %8, %cst_7 [1] : vector<16x32xf32> to vector<16xf32>
    %10 = vector.shape_cast %9 : vector<16xf32> to vector<16x1xf32>
    %cst_8 = arith.constant 3.200000e+01 : f32
    %11 = vector.broadcast %cst_8 : f32 to vector<16x1xf32>
    %12 = arith.divf %10, %11 : vector<16x1xf32>
    %13 = vector.broadcast %12 : vector<16x1xf32> to vector<16x32xf32>
    %14 = arith.subf %8, %13 : vector<16x32xf32>
    %15 = arith.mulf %14, %14 : vector<16x32xf32>
    %cst_9 = arith.constant dense<0.000000e+00> : vector<16xf32>
    %16 = vector.multi_reduction <add>, %15, %cst_9 [1] : vector<16x32xf32> to vector<16xf32>
    %17 = vector.shape_cast %16 : vector<16xf32> to vector<16x1xf32>
    %cst_10 = arith.constant 3.200000e+01 : f32
    %18 = vector.broadcast %cst_10 : f32 to vector<16x1xf32>
    %19 = arith.divf %17, %18 : vector<16x1xf32>
    %20 = vector.broadcast %12 : vector<16x1xf32> to vector<16x32xf32>
    %21 = arith.subf %8, %20 : vector<16x32xf32>
    %cst_11 = arith.constant 9.99999996E-13 : f32
    %22 = vector.broadcast %cst_11 : f32 to vector<16x1xf32>
    %23 = arith.addf %19, %22 : vector<16x1xf32>
    %24 = math.rsqrt %23 : vector<16x1xf32>
    %25 = vector.broadcast %24 : vector<16x1xf32> to vector<16x32xf32>
    %26 = arith.mulf %21, %25 : vector<16x32xf32>
    %c0_12 = arith.constant 0 : index
    %c0_13 = arith.constant 0 : index
    %27 = vector.load %arg5[%c0_12, %c0_13] : memref<1x32xf32, #tpu.memory_space<vmem>>, vector<1x32xf32>
    %28 = vector.broadcast %27 : vector<1x32xf32> to vector<16x32xf32>
    %29 = arith.mulf %26, %28 : vector<16x32xf32>
    %c0_14 = arith.constant 0 : index
    %c0_15 = arith.constant 0 : index
    %30 = vector.load %arg6[%c0_14, %c0_15] : memref<1x32xf32, #tpu.memory_space<vmem>>, vector<1x32xf32>
    %31 = vector.broadcast %30 : vector<1x32xf32> to vector<16x32xf32>
    %32 = arith.addf %29, %31 : vector<16x32xf32>
    %33 = arith.truncf %32 : vector<16x32xf32> to vector<16x32xbf16>
    %c0_16 = arith.constant 0 : index
    %c0_17 = arith.constant 0 : index
    %34 = vector.load %arg7[%c0_16, %c0_17] : memref<16x32xbf16, #tpu.memory_space<vmem>>, vector<16x32xbf16>
    tpu.vector_store %arg7[%c0_16, %c0_17], %33 {strides = array<i32>} : memref<16x32xbf16, #tpu.memory_space<vmem>>, vector<16x32xbf16>,
    return
  }
  func.func @transform_0(%arg0: i32) -> (i32, i32) {
    %c0_i32 = arith.constant 0 : i32
    %c0_i32_0 = arith.constant 0 : i32
    return %arg0, %c0_i32 : i32, i32
  }
  func.func @transform_1(%arg0: i32) -> (i32, i32) {
    %c0_i32 = arith.constant 0 : i32
    %c0_i32_0 = arith.constant 0 : i32
    %c0_i32_1 = arith.constant 0 : i32
    return %c0_i32, %c0_i32_0 : i32, i32
  }
  func.func @transform_2(%arg0: i32) -> (i32, i32) {
    %c0_i32 = arith.constant 0 : i32
    %c0_i32_0 = arith.constant 0 : i32
    %c0_i32_1 = arith.constant 0 : i32
    return %c0_i32, %c0_i32_0 : i32, i32
  }
  func.func @transform_3(%arg0: i32) -> (i32, i32) {
    %c0_i32 = arith.constant 0 : i32
    %c0_i32_0 = arith.constant 0 : i32
    return %arg0, %c0_i32 : i32, i32
  }
  func.func @transform_4(%arg0: i32) -> (i32, i32) {
    %c0_i32 = arith.constant 0 : i32
    %c0_i32_0 = arith.constant 0 : i32
    %c0_i32_1 = arith.constant 0 : i32
    return %c0_i32, %c0_i32_0 : i32, i32
  }
  func.func @transform_5(%arg0: i32) -> (i32, i32) {
    %c0_i32 = arith.constant 0 : i32
    %c0_i32_0 = arith.constant 0 : i32
    %c0_i32_1 = arith.constant 0 : i32
    return %c0_i32, %c0_i32_0 : i32, i32
  }
  func.func @transform_6(%arg0: i32) -> (i32, i32) {
    %c0_i32 = arith.constant 0 : i32
    %c0_i32_0 = arith.constant 0 : i32
    return %arg0, %c0_i32 : i32, i32
  }
}

module attributes {stable_mosaic.version = 11 : i64} {
  func.func @_linear_kernel(%arg0: i32, %arg1: memref<16x32xbf16, #tpu.memory_space<vmem>>, %arg2: memref<32x64xbf16, #tpu.memory_space<vmem>>, %arg3: memref<1x64xf32, #tpu.memory_space<vmem>>, %arg4: memref<16x64xbf16, #tpu.memory_space<vmem>>) attributes {dimension_semantics = [#tpu.dimension_semantics<parallel>], iteration_bounds = array<i64: 1>, scalar_prefetch = 0 : i64, scratch_operands = 0 : i64, tpu.core_type = #tpu.core_type<tc>, window_params = [{transform_indices = @transform_0, window_bounds = array<i64: 16, 32>}, {pipeline_mode = #tpu.pipeline_mode<synchronous>, transform_indices = @transform_1, window_bounds = array<i64: 32, 64>}, {pipeline_mode = #tpu.pipeline_mode<synchronous>, transform_indices = @transform_2, window_bounds = array<i64: 1, 64>}, {transform_indices = @transform_3, window_bounds = array<i64: 16, 64>}]} {
    %c0 = arith.constant 0 : index
    %c0_0 = arith.constant 0 : index
    %0 = vector.load %arg1[%c0, %c0_0] : memref<16x32xbf16, #tpu.memory_space<vmem>>, vector<16x32xbf16>
    %c0_1 = arith.constant 0 : index
    %c0_2 = arith.constant 0 : index
    %1 = vector.load %arg2[%c0_1, %c0_2] : memref<32x64xbf16, #tpu.memory_space<vmem>>, vector<32x64xbf16>
    %cst = arith.constant dense<0.000000e+00> : vector<16x64xf32>
    %2 = tpu.matmul %0, %1, %cst {dimension_numbers = #tpu.dot_dimension_numbers<[1], [0], [0], [1], [0, 0, 1, 1], [], []>} : vector<16x32xbf16>, vector<32x64xbf16>, vector<16x64xf32> -> vector<16x64xf32>
    %c0_3 = arith.constant 0 : index
    %c0_4 = arith.constant 0 : index
    %3 = vector.load %arg3[%c0_3, %c0_4] : memref<1x64xf32, #tpu.memory_space<vmem>>, vector<1x64xf32>
    %4 = vector.broadcast %3 : vector<1x64xf32> to vector<16x64xf32>
    %5 = arith.addf %2, %4 : vector<16x64xf32>
    %6 = arith.mulf %5, %5 : vector<16x64xf32>
    %7 = arith.mulf %5, %6 : vector<16x64xf32>
    %cst_5 = arith.constant 4.471500e-02 : f32
    %8 = vector.broadcast %cst_5 : f32 to vector<16x64xf32>
    %9 = arith.mulf %8, %7 : vector<16x64xf32>
    %10 = arith.addf %5, %9 : vector<16x64xf32>
    %cst_6 = arith.constant 0.797884583 : f32
    %11 = vector.broadcast %cst_6 : f32 to vector<16x64xf32>
    %12 = arith.mulf %11, %10 : vector<16x64xf32>
    %13 = math.tanh %12 : vector<16x64xf32>
    %cst_7 = arith.constant 1.000000e+00 : f32
    %14 = vector.broadcast %cst_7 : f32 to vector<16x64xf32>
    %15 = arith.addf %14, %13 : vector<16x64xf32>
    %cst_8 = arith.constant 5.000000e-01 : f32
    %16 = vector.broadcast %cst_8 : f32 to vector<16x64xf32>
    %17 = arith.mulf %16, %15 : vector<16x64xf32>
    %18 = arith.mulf %5, %17 : vector<16x64xf32>
    %19 = arith.truncf %18 : vector<16x64xf32> to vector<16x64xbf16>
    %c0_9 = arith.constant 0 : index
    %c0_10 = arith.constant 0 : index
    %20 = vector.load %arg4[%c0_9, %c0_10] : memref<16x64xbf16, #tpu.memory_space<vmem>>, vector<16x64xbf16>
    tpu.vector_store %arg4[%c0_9, %c0_10], %19 {strides = array<i32>} : memref<16x64xbf16, #tpu.memory_space<vmem>>, vector<16x64xbf16>,
    return
  }
  func.func @transform_0(%arg0: i32) -> (i32, i32) {
    %c0_i32 = arith.constant 0 : i32
    %c0_i32_0 = arith.constant 0 : i32
    return %arg0, %c0_i32 : i32, i32
  }
  func.func @transform_1(%arg0: i32) -> (i32, i32) {
    %c0_i32 = arith.constant 0 : i32
    %c0_i32_0 = arith.constant 0 : i32
    %c0_i32_1 = arith.constant 0 : i32
    return %c0_i32, %c0_i32_0 : i32, i32
  }
  func.func @transform_2(%arg0: i32) -> (i32, i32) {
    %c0_i32 = arith.constant 0 : i32
    %c0_i32_0 = arith.constant 0 : i32
    %c0_i32_1 = arith.constant 0 : i32
    return %c0_i32, %c0_i32_0 : i32, i32
  }
  func.func @transform_3(%arg0: i32) -> (i32, i32) {
    %c0_i32 = arith.constant 0 : i32
    %c0_i32_0 = arith.constant 0 : i32
    return %arg0, %c0_i32 : i32, i32
  }
}

module attributes {stable_mosaic.version = 11 : i64} {
  func.func @_linear_res_ln_kernel(%arg0: i32, %arg1: memref<16x64xbf16, #tpu.memory_space<vmem>>, %arg2: memref<64x32xbf16, #tpu.memory_space<vmem>>, %arg3: memref<1x32xf32, #tpu.memory_space<vmem>>, %arg4: memref<16x32xbf16, #tpu.memory_space<vmem>>, %arg5: memref<1x32xf32, #tpu.memory_space<vmem>>, %arg6: memref<1x32xf32, #tpu.memory_space<vmem>>, %arg7: memref<16x32xbf16, #tpu.memory_space<vmem>>) attributes {dimension_semantics = [#tpu.dimension_semantics<parallel>], iteration_bounds = array<i64: 1>, scalar_prefetch = 0 : i64, scratch_operands = 0 : i64, tpu.core_type = #tpu.core_type<tc>, window_params = [{transform_indices = @transform_0, window_bounds = array<i64: 16, 64>}, {pipeline_mode = #tpu.pipeline_mode<synchronous>, transform_indices = @transform_1, window_bounds = array<i64: 64, 32>}, {pipeline_mode = #tpu.pipeline_mode<synchronous>, transform_indices = @transform_2, window_bounds = array<i64: 1, 32>}, {transform_indices = @transform_3, window_bounds = array<i64: 16, 32>}, {pipeline_mode = #tpu.pipeline_mode<synchronous>, transform_indices = @transform_4, window_bounds = array<i64: 1, 32>}, {pipeline_mode = #tpu.pipeline_mode<synchronous>, transform_indices = @transform_5, window_bounds = array<i64: 1, 32>}, {transform_indices = @transform_6, window_bounds = array<i64: 16, 32>}]} {
    %c0 = arith.constant 0 : index
    %c0_0 = arith.constant 0 : index
    %0 = vector.load %arg1[%c0, %c0_0] : memref<16x64xbf16, #tpu.memory_space<vmem>>, vector<16x64xbf16>
    %c0_1 = arith.constant 0 : index
    %c0_2 = arith.constant 0 : index
    %1 = vector.load %arg2[%c0_1, %c0_2] : memref<64x32xbf16, #tpu.memory_space<vmem>>, vector<64x32xbf16>
    %cst = arith.constant dense<0.000000e+00> : vector<16x32xf32>
    %2 = tpu.matmul %0, %1, %cst {dimension_numbers = #tpu.dot_dimension_numbers<[1], [0], [0], [1], [0, 0, 1, 1], [], []>} : vector<16x64xbf16>, vector<64x32xbf16>, vector<16x32xf32> -> vector<16x32xf32>
    %c0_3 = arith.constant 0 : index
    %c0_4 = arith.constant 0 : index
    %3 = vector.load %arg3[%c0_3, %c0_4] : memref<1x32xf32, #tpu.memory_space<vmem>>, vector<1x32xf32>
    %4 = vector.broadcast %3 : vector<1x32xf32> to vector<16x32xf32>
    %5 = arith.addf %2, %4 : vector<16x32xf32>
    %c0_5 = arith.constant 0 : index
    %c0_6 = arith.constant 0 : index
    %6 = vector.load %arg4[%c0_5, %c0_6] : memref<16x32xbf16, #tpu.memory_space<vmem>>, vector<16x32xbf16>
    %7 = arith.extf %6 : vector<16x32xbf16> to vector<16x32xf32>
    %8 = arith.addf %5, %7 : vector<16x32xf32>
    %cst_7 = arith.constant dense<0.000000e+00> : vector<16xf32>
    %9 = vector.multi_reduction <add>, %8, %cst_7 [1] : vector<16x32xf32> to vector<16xf32>
    %10 = vector.shape_cast %9 : vector<16xf32> to vector<16x1xf32>
    %cst_8 = arith.constant 3.200000e+01 : f32
    %11 = vector.broadcast %cst_8 : f32 to vector<16x1xf32>
    %12 = arith.divf %10, %11 : vector<16x1xf32>
    %13 = vector.broadcast %12 : vector<16x1xf32> to vector<16x32xf32>
    %14 = arith.subf %8, %13 : vector<16x32xf32>
    %15 = arith.mulf %14, %14 : vector<16x32xf32>
    %cst_9 = arith.constant dense<0.000000e+00> : vector<16xf32>
    %16 = vector.multi_reduction <add>, %15, %cst_9 [1] : vector<16x32xf32> to vector<16xf32>
    %17 = vector.shape_cast %16 : vector<16xf32> to vector<16x1xf32>
    %cst_10 = arith.constant 3.200000e+01 : f32
    %18 = vector.broadcast %cst_10 : f32 to vector<16x1xf32>
    %19 = arith.divf %17, %18 : vector<16x1xf32>
    %20 = vector.broadcast %12 : vector<16x1xf32> to vector<16x32xf32>
    %21 = arith.subf %8, %20 : vector<16x32xf32>
    %cst_11 = arith.constant 9.99999996E-13 : f32
    %22 = vector.broadcast %cst_11 : f32 to vector<16x1xf32>
    %23 = arith.addf %19, %22 : vector<16x1xf32>
    %24 = math.rsqrt %23 : vector<16x1xf32>
    %25 = vector.broadcast %24 : vector<16x1xf32> to vector<16x32xf32>
    %26 = arith.mulf %21, %25 : vector<16x32xf32>
    %c0_12 = arith.constant 0 : index
    %c0_13 = arith.constant 0 : index
    %27 = vector.load %arg5[%c0_12, %c0_13] : memref<1x32xf32, #tpu.memory_space<vmem>>, vector<1x32xf32>
    %28 = vector.broadcast %27 : vector<1x32xf32> to vector<16x32xf32>
    %29 = arith.mulf %26, %28 : vector<16x32xf32>
    %c0_14 = arith.constant 0 : index
    %c0_15 = arith.constant 0 : index
    %30 = vector.load %arg6[%c0_14, %c0_15] : memref<1x32xf32, #tpu.memory_space<vmem>>, vector<1x32xf32>
    %31 = vector.broadcast %30 : vector<1x32xf32> to vector<16x32xf32>
    %32 = arith.addf %29, %31 : vector<16x32xf32>
    %33 = arith.truncf %32 : vector<16x32xf32> to vector<16x32xbf16>
    %c0_16 = arith.constant 0 : index
    %c0_17 = arith.constant 0 : index
    %34 = vector.load %arg7[%c0_16, %c0_17] : memref<16x32xbf16, #tpu.memory_space<vmem>>, vector<16x32xbf16>
    tpu.vector_store %arg7[%c0_16, %c0_17], %33 {strides = array<i32>} : memref<16x32xbf16, #tpu.memory_space<vmem>>, vector<16x32xbf16>,
    return
  }
  func.func @transform_0(%arg0: i32) -> (i32, i32) {
    %c0_i32 = arith.constant 0 : i32
    %c0_i32_0 = arith.constant 0 : i32
    return %arg0, %c0_i32 : i32, i32
  }
  func.func @transform_1(%arg0: i32) -> (i32, i32) {
    %c0_i32 = arith.constant 0 : i32
    %c0_i32_0 = arith.constant 0 : i32
    %c0_i32_1 = arith.constant 0 : i32
    return %c0_i32, %c0_i32_0 : i32, i32
  }
  func.func @transform_2(%arg0: i32) -> (i32, i32) {
    %c0_i32 = arith.constant 0 : i32
    %c0_i32_0 = arith.constant 0 : i32
    %c0_i32_1 = arith.constant 0 : i32
    return %c0_i32, %c0_i32_0 : i32, i32
  }
  func.func @transform_3(%arg0: i32) -> (i32, i32) {
    %c0_i32 = arith.constant 0 : i32
    %c0_i32_0 = arith.constant 0 : i32
    return %arg0, %c0_i32 : i32, i32
  }
  func.func @transform_4(%arg0: i32) -> (i32, i32) {
    %c0_i32 = arith.constant 0 : i32
    %c0_i32_0 = arith.constant 0 : i32
    %c0_i32_1 = arith.constant 0 : i32
    return %c0_i32, %c0_i32_0 : i32, i32
  }
  func.func @transform_5(%arg0: i32) -> (i32, i32) {
    %c0_i32 = arith.constant 0 : i32
    %c0_i32_0 = arith.constant 0 : i32
    %c0_i32_1 = arith.constant 0 : i32
    return %c0_i32, %c0_i32_0 : i32, i32
  }
  func.func @transform_6(%arg0: i32) -> (i32, i32) {
    %c0_i32 = arith.constant 0 : i32
    %c0_i32_0 = arith.constant 0 : i32
    return %arg0, %c0_i32 : i32, i32
  }
}

module attributes {stable_mosaic.version = 11 : i64} {
  func.func @_linear_kernel(%arg0: i32, %arg1: memref<2x32xbf16, #tpu.memory_space<vmem>>, %arg2: memref<32x32xbf16, #tpu.memory_space<vmem>>, %arg3: memref<1x32xf32, #tpu.memory_space<vmem>>, %arg4: memref<2x32xbf16, #tpu.memory_space<vmem>>) attributes {dimension_semantics = [#tpu.dimension_semantics<parallel>], iteration_bounds = array<i64: 1>, scalar_prefetch = 0 : i64, scratch_operands = 0 : i64, tpu.core_type = #tpu.core_type<tc>, window_params = [{transform_indices = @transform_0, window_bounds = array<i64: 2, 32>}, {pipeline_mode = #tpu.pipeline_mode<synchronous>, transform_indices = @transform_1, window_bounds = array<i64: 32, 32>}, {pipeline_mode = #tpu.pipeline_mode<synchronous>, transform_indices = @transform_2, window_bounds = array<i64: 1, 32>}, {transform_indices = @transform_3, window_bounds = array<i64: 2, 32>}]} {
    %c0 = arith.constant 0 : index
    %c0_0 = arith.constant 0 : index
    %0 = vector.load %arg1[%c0, %c0_0] : memref<2x32xbf16, #tpu.memory_space<vmem>>, vector<2x32xbf16>
    %c0_1 = arith.constant 0 : index
    %c0_2 = arith.constant 0 : index
    %1 = vector.load %arg2[%c0_1, %c0_2] : memref<32x32xbf16, #tpu.memory_space<vmem>>, vector<32x32xbf16>
    %cst = arith.constant dense<0.000000e+00> : vector<2x32xf32>
    %2 = tpu.matmul %0, %1, %cst {dimension_numbers = #tpu.dot_dimension_numbers<[1], [0], [0], [1], [0, 0, 1, 1], [], []>} : vector<2x32xbf16>, vector<32x32xbf16>, vector<2x32xf32> -> vector<2x32xf32>
    %c0_3 = arith.constant 0 : index
    %c0_4 = arith.constant 0 : index
    %3 = vector.load %arg3[%c0_3, %c0_4] : memref<1x32xf32, #tpu.memory_space<vmem>>, vector<1x32xf32>
    %4 = vector.broadcast %3 : vector<1x32xf32> to vector<2x32xf32>
    %5 = arith.addf %2, %4 : vector<2x32xf32>
    %6 = math.tanh %5 : vector<2x32xf32>
    %7 = arith.truncf %6 : vector<2x32xf32> to vector<2x32xbf16>
    %c0_5 = arith.constant 0 : index
    %c0_6 = arith.constant 0 : index
    %8 = vector.load %arg4[%c0_5, %c0_6] : memref<2x32xbf16, #tpu.memory_space<vmem>>, vector<2x32xbf16>
    tpu.vector_store %arg4[%c0_5, %c0_6], %7 {strides = array<i32>} : memref<2x32xbf16, #tpu.memory_space<vmem>>, vector<2x32xbf16>,
    return
  }
  func.func @transform_0(%arg0: i32) -> (i32, i32) {
    %c0_i32 = arith.constant 0 : i32
    %c0_i32_0 = arith.constant 0 : i32
    return %arg0, %c0_i32 : i32, i32
  }
  func.func @transform_1(%arg0: i32) -> (i32, i32) {
    %c0_i32 = arith.constant 0 : i32
    %c0_i32_0 = arith.constant 0 : i32
    %c0_i32_1 = arith.constant 0 : i32
    return %c0_i32, %c0_i32_0 : i32, i32
  }
  func.func @transform_2(%arg0: i32) -> (i32, i32) {
    %c0_i32 = arith.constant 0 : i32
    %c0_i32_0 = arith.constant 0 : i32
    %c0_i32_1 = arith.constant 0 : i32
    return %c0_i32, %c0_i32_0 : i32, i32
  }
  func.func @transform_3(%arg0: i32) -> (i32, i32) {
    %c0_i32 = arith.constant 0 : i32
    %c0_i32_0 = arith.constant 0 : i32
    return %arg0, %c0_i32 : i32, i32
  }
}

module attributes {stable_mosaic.version = 11 : i64} {
  func.func @_linear_kernel(%arg0: i32, %arg1: memref<2x32xbf16, #tpu.memory_space<vmem>>, %arg2: memref<32x3xbf16, #tpu.memory_space<vmem>>, %arg3: memref<1x3xf32, #tpu.memory_space<vmem>>, %arg4: memref<2x3xf32, #tpu.memory_space<vmem>>) attributes {dimension_semantics = [#tpu.dimension_semantics<parallel>], iteration_bounds = array<i64: 1>, scalar_prefetch = 0 : i64, scratch_operands = 0 : i64, tpu.core_type = #tpu.core_type<tc>, window_params = [{transform_indices = @transform_0, window_bounds = array<i64: 2, 32>}, {pipeline_mode = #tpu.pipeline_mode<synchronous>, transform_indices = @transform_1, window_bounds = array<i64: 32, 3>}, {pipeline_mode = #tpu.pipeline_mode<synchronous>, transform_indices = @transform_2, window_bounds = array<i64: 1, 3>}, {transform_indices = @transform_3, window_bounds = array<i64: 2, 3>}]} {
    %c0 = arith.constant 0 : index
    %c0_0 = arith.constant 0 : index
    %0 = vector.load %arg1[%c0, %c0_0] : memref<2x32xbf16, #tpu.memory_space<vmem>>, vector<2x32xbf16>
    %c0_1 = arith.constant 0 : index
    %c0_2 = arith.constant 0 : index
    %1 = vector.load %arg2[%c0_1, %c0_2] : memref<32x3xbf16, #tpu.memory_space<vmem>>, vector<32x3xbf16>
    %cst = arith.constant dense<0.000000e+00> : vector<2x3xf32>
    %2 = tpu.matmul %0, %1, %cst {dimension_numbers = #tpu.dot_dimension_numbers<[1], [0], [0], [1], [0, 0, 1, 1], [], []>} : vector<2x32xbf16>, vector<32x3xbf16>, vector<2x3xf32> -> vector<2x3xf32>
    %c0_3 = arith.constant 0 : index
    %c0_4 = arith.constant 0 : index
    %3 = vector.load %arg3[%c0_3, %c0_4] : memref<1x3xf32, #tpu.memory_space<vmem>>, vector<1x3xf32>
    %4 = vector.broadcast %3 : vector<1x3xf32> to vector<2x3xf32>
    %5 = arith.addf %2, %4 : vector<2x3xf32>
    %c0_5 = arith.constant 0 : index
    %c0_6 = arith.constant 0 : index
    %6 = vector.load %arg4[%c0_5, %c0_6] : memref<2x3xf32, #tpu.memory_space<vmem>>, vector<2x3xf32>
    tpu.vector_store %arg4[%c0_5, %c0_6], %5 {strides = array<i32>} : memref<2x3xf32, #tpu.memory_space<vmem>>, vector<2x3xf32>,
    return
  }
  func.func @transform_0(%arg0: i32) -> (i32, i32) {
    %c0_i32 = arith.constant 0 : i32
    %c0_i32_0 = arith.constant 0 : i32
    return %arg0, %c0_i32 : i32, i32
  }
  func.func @transform_1(%arg0: i32) -> (i32, i32) {
    %c0_i32 = arith.constant 0 : i32
    %c0_i32_0 = arith.constant 0 : i32
    %c0_i32_1 = arith.constant 0 : i32
    return %c0_i32, %c0_i32_0 : i32, i32
  }
  func.func @transform_2(%arg0: i32) -> (i32, i32) {
    %c0_i32 = arith.constant 0 : i32
    %c0_i32_0 = arith.constant 0 : i32
    %c0_i32_1 = arith.constant 0 : i32
    return %c0_i32, %c0_i32_0 : i32, i32
  }
  func.func @transform_3(%arg0: i32) -> (i32, i32) {
    %c0_i32 = arith.constant 0 : i32
    %c0_i32_0 = arith.constant 0 : i32
    return %arg0, %c0_i32 : i32, i32
  }
}

</mosaic_0001>

<bundles_post_ra>
// kernel: bert_classifier_forward.13
= control target key start
LH: loop header
LB: loop body
LE: loop exit
PB: predicated region body
PF: predicated region fallthrough
CT: control target
= control target key end

     0   :  { %vm16_vm0 = vcmask 261120   ;;  %v98_v4 = vmov 32.0   ;;  %vm82_vm6 = vcmask 257024   ;;  %s141_s0 = inlined_call_operand.vmem [shape: f32[16,32], index: 0, kind: input, shape index: {}]   ;;  %s142_s1 = inlined_call_operand.vmem [shape: f32[1,32], index: 1, kind: input, shape index: {}]   ;;  %s143_s2 = inlined_call_operand.vmem [shape: f32[1,32], index: 2, kind: input, shape index: {}]   ;;  %s144_s3 = inlined_call_operand.vmem [shape: bf16[16,32], index: 3, kind: output, shape index: {}]  }
   0x1   :  { %v14_v0 = vld [vmem:[%s141_s0] sm:$0xff]  ;;  %v15_v2 = vld [vmem:[%s141_s0 + $0x8] sm:$0xff]  ;;  %92 = vrcp.f32 %v98_v4 }
   0x2   :  { %v17_v1 = vsel %vm16_vm0, %v14_v0, 0.0  ;;  %v20_v3 = vsel %vm16_vm0, %v15_v2, 0.0  ;;  %v90_v35 = vld [vmem:[%s142_s1] ss:$0 sm:$0xff] }
   0x3   :  { %18 = vadd.xlane.f32.xlu0 %v17_v1  ;;  %v91_v38 = vld [vmem:[%s143_s2] ss:$0 sm:$0xff] }
   0x7   :  { %v93_v5 = vpop.eup %92 }
   0x8   :  { %v24_v6 = vmul.f32 32.0, %v93_v5  ;;  %vm28_vm1 = vweird.f32 %v93_v5 }
   0xa   :  { %v25_v7 = vsub.f32 1.0, %v24_v6 }
   0xb   :  { %21 = vadd.xlane.f32.xlu0 %v20_v3 }
   0xc   :  { %v26_v8 = vmul.f32 %v93_v5, %v25_v7 }
   0xe   :  { %v27_v9 = vadd.f32 %v93_v5, %v26_v8 }
  0x10   :  { %v29_v10 = vsel %vm28_vm1, %v93_v5, %v27_v9 }
  0x76   :  { %v19_v11 = vpop.xlane.xlu0 %18 }
  0x77   :  { %v30_v12 = vmul.f32 %v29_v10, %v19_v11 }
  0x79   :  { %v32_v13 = vsub.f32 %v14_v0, %v30_v12 }
  0x7b   :  { %v34_v14 = vmul.f32 %v32_v13, %v32_v13 }
  0x7d   :  { %v36_v15 = vsel %vm16_vm0, %v34_v14, 0.0 }
  0x7e   :  { %37 = vadd.xlane.f32.xlu1 %v36_v15  ;;  %v22_v16 = vpop.xlane.xlu0 %21 }
  0x7f   :  { %v31_v17 = vmul.f32 %v29_v10, %v22_v16 }
  0x81   :  { %v33_v18 = vsub.f32 %v15_v2, %v31_v17 }
  0x83   :  { %v35_v19 = vmul.f32 %v33_v18, %v33_v18 }
  0x85   :  { %v39_v20 = vsel %vm16_vm0, %v35_v19, 0.0 }
  0x86   :  { %40 = vadd.xlane.f32.xlu1 %v39_v20 }
  0xf1   :  { %v38_v21 = vpop.xlane.xlu1 %37 }
  0xf2   :  { %v42_v22 = vmul.f32 %v38_v21, %v29_v10 }
  0xf4   :  { %v44_v23 = vadd.f32 1e-12, %v42_v22 }
  0xf6   :  { %94 = vrsqrt.f32 %v44_v23  ;;  %vm52_vm3 = vweird.f32 %v44_v23 }
  0xf9   :  { %v41_v24 = vpop.xlane.xlu1 %40 }
  0xfa   :  { %v43_v25 = vmul.f32 %v41_v24, %v29_v10 }
  0xfc   :  { %v95_v26 = vpop.eup %94  ;;  %v45_v27 = vadd.f32 1e-12, %v43_v25 }
  0xfd   :  { %v47_v28 = vmul.f32 %v95_v26, %v44_v23  ;;  %vm53_vm2 = vweird.f32 %v95_v26 }
  0xfe   :  { %96 = vrsqrt.f32 %v45_v27  ;;  %vm54_vm4 = vmor %vm52_vm3, %vm53_vm2  ;;  %vm62_vm7 = vweird.f32 %v45_v27 }
  0xff   :  { %v48_v29 = vmul.f32 %v95_v26, %v47_v28 }
 0x101   :  { %v49_v30 = vmul.f32 0.5, %v48_v29 }
 0x103   :  { %v50_v31 = vsub.f32 1.5, %v49_v30 }
 0x104   :  { %v97_v32 = vpop.eup %96 }
 0x105   :  { %v51_v33 = vmul.f32 %v95_v26, %v50_v31  ;;  %v57_v34 = vmul.f32 %v97_v32, %v45_v27  ;;  %vm63_vm5 = vweird.f32 %v97_v32 }
 0x106   :  { %vm64_vm8 = vmor %vm62_vm7, %vm63_vm5 }
 0x107   :  { %v55_v36 = vsel %vm54_vm4, %v95_v26, %v51_v33  ;;  %v58_v37 = vmul.f32 %v97_v32, %v57_v34 }
 0x108   :  { %v66_v39 = vmul.f32 %v55_v36, %v32_v13 }
 0x109   :  { %v59_v40 = vmul.f32 0.5, %v58_v37 }
 0x10a   :  { %v72_v41 = vmul.f32 %v90_v35, %v66_v39 }
 0x10b   :  { %v60_v42 = vsub.f32 1.5, %v59_v40 }
 0x10c   :  { %v78_v43 = vadd.f32 %v91_v38, %v72_v41 }
 0x10d   :  { %v61_v44 = vmul.f32 %v97_v32, %v60_v42 }
 0x10e   :  { %v80_v45 = vpack.c.bf16 %v78_v43, %v78_v43 }
 0x10f   :  { %v65_v46 = vsel %vm64_vm8, %v97_v32, %v61_v44 }
 0x110   :  { %83 = vst.msk [vmem:[%s144_s3] sm:$0xf] %vm82_vm6, %v80_v45  ;;  %v67_v47 = vmul.f32 %v65_v46, %v33_v18 }
 0x112   :  { %v73_v48 = vmul.f32 %v90_v35, %v67_v47 }
 0x114   :  { %v79_v49 = vadd.f32 %v91_v38, %v73_v48 }
 0x116   :  { %v81_v50 = vpack.c.bf16 %v79_v49, %v79_v49 }
 0x118   :  { %84 = vst.msk [vmem:[%s144_s3 + $0x4] sm:$0xf] %vm82_vm6, %v81_v50 }

// kernel: bert_classifier_forward.14
= control target key start
LH: loop header
LB: loop body
LE: loop exit
PB: predicated region body
PF: predicated region fallthrough
CT: control target
= control target key end

     0   :  { %vm42_vm0 = vcmask 261120   ;;  %vm62_vm1 = vcmask 781312   ;;  %s124_s1 = inlined_call_operand.vmem [shape: bf16[32,96], index: 1, kind: input, shape index: {}]   ;;  %s125_s2 = inlined_call_operand.vmem [shape: f32[1,96], index: 2, kind: input, shape index: {}]   ;;  %s126_s0 = inlined_call_operand.vmem [shape: bf16[16,32], index: 0, kind: input, shape index: {}]   ;;  %s127_s3 = inlined_call_operand.vmem [shape: bf16[16,96], index: 3, kind: output, shape index: {}]  }
   0x1   :  { %v84_v0 = vld [vmem:[%s124_s1 + $0x8] sm:$0xff]  ;;  %v83_v1 = vld [vmem:[%s124_s1] sm:$0xff] }
   0x2   :  { %52 = vmatpush.bf16.msra.mxu0 %v84_v0  ;;  %v82_v2 = vld [vmem:[%s126_s0] sm:$0xff] }
   0x3   :  { %v85_v3 = vld [vmem:[%s125_s2] ss:$0 sm:$0xff] }
   0x6   :  { %53 = vmatpush.bf16.msra.mxu0 %v83_v1 }
   0x9   :  { %81 = vmatmul.msk.bf16.vlgmr.msra.gmra.mxu0 %vm42_vm0, %v82_v2 }
  0x86   :  { %v55_v4 = vpop.f32.mrf.mxu0 }
  0x87   :  { %v56_v5 = vadd.f32 %v85_v3, %v55_v4 }
  0x89   :  { %v60_v6 = vpack.c.bf16 %v56_v5, %v56_v5 }
  0x8b   :  { %63 = vst.msk [vmem:[%s127_s3] sm:$0xf] %vm62_vm1, %v60_v6 }
  0x8e   :  { %v57_v7 = vpop.f32.mrf.mxu0 }
  0x8f   :  { %v58_v8 = vadd.f32 %v85_v3, %v57_v7 }
  0x91   :  { %v61_v9 = vpack.c.bf16 %v58_v8, %v58_v8 }
  0x93   :  { %64 = vst.msk [vmem:[%s127_s3 + $0x4] sm:$0xf] %vm62_vm1, %v61_v9 }

// kernel: bert_classifier_forward.15
= control target key start
LH: loop header
LB: loop body
LE: loop exit
PB: predicated region body
PF: predicated region fallthrough
CT: control target
= control target key end

     0   :  { %s489_s9 = smov 0   ;;  %s491_s10 = smov 0   ;;  %s539_s0 = inlined_call_operand.vmem [shape: bf16[16,96], index: 0, kind: input, shape index: {}]   ;;  %s540_s1 = inlined_call_operand.vmem [shape: f32[2,1,8], index: 1, kind: input, shape index: {}]   ;;  %s541_s2 = inlined_call_operand.vmem [shape: bf16[16,32], index: 2, kind: output, shape index: {}]  }
   0x1   :  { %s493_s11 = smov 0  }
   0x2 LB: > { %s24_s12 = sadd.s32 1, %s462_s10  ;;  %p396_p0 = scmp.ge.s32.totalorder %s466_s11, 1  ;;  %s466_s11 = sphi %s493_s11, %s12_s11   ;;  %s462_s10 = sphi %s491_s10, %s543_s10   ;;  %s458_s9 = sphi %s489_s9, %s542_s9  }
   0x3   : > { %p26_p1 = scmp.ge.s32.totalorder %s24_s12, 2  ;;  %p133_p2 = scmp.lt.s32.totalorder %s466_s11, 3 }
   0x5   : > { %s545_s12 = smov (%p26_p1, %s24_s12), 0  ;;  %p134_p3 = pnand %p396_p0, %p133_p2 }
   0x6   : > { %p157_p4 = scmp.lt.s32.totalorder (!%p134_p3), %s458_s9, 1  ;;  %s468_s20 = smov (!%p134_p3), 80  }
   0x7   : > { %137 = sbr.rel (%p134_p3) target bundleno = 659 (0x293), region = 28  ;;  %s469_s21 = smov (!%p134_p3), 96  }
   0x8   : > { %s470_s22 = smov (!%p134_p3), 48   ;;  %s471_s23 = smov (!%p134_p3), 112  }
   0x9   : > { %s472_s24 = smov (!%p134_p3), 64   ;;  %s473_s28 = smov (!%p134_p3), 16  }
   0xc   : > { %s547_s9 = smov (!%p157_p4, %s458_s9), 1  ;;  %vm187_vm0 = vcmask 130048   ;;  %vm207_vm1 = vcmask 64512   ;;  %vm224_vm2 = vcmask 1043456   ;;  %vm243_vm3 = vcmask 125952  }
   0xd   : > { %s397_s13 = sshll.u32 %s547_s9, 2  ;;  %s163_s19 = scalar_lea.vmem %s540_s1, %s547_s9  ;;  %vm314_vm4 = vcmask 257152  }
   0xe   : > { %s160_s16 = scalar_lea.vmem %s539_s0, %s397_s13  ;;  %v435_v15 = vld [vmem:[%s163_s19] ss:$0 sm:$0xff]  ;;  %s168_s27 = scalar_lea.vmem %s541_s2, %s397_s13 }
   0xf   : > { %v246_v0 = vld [vmem:[%s160_s16] sm:$0xf] }
  0x10   : > { %v181_v1 = vld [vmem:[%s160_s16] sm:$0xf]  ;;  %v253_v2 = vunpack.c.l.b16 %v246_v0 }
  0x11   : > { %v183_v3 = vunpack.c.l.b16 %v181_v1  ;;  %v245_v4 = vld [vmem:[%s160_s16] sm:$0xf] }
  0x12   : > { %v254_v5 = vpack.c.b16 %v253_v2, %v253_v2  ;;  %v248_v7 = vunpack.c.l.b16 %v245_v4  ;;  %v180_v13 = vld [vmem:[%s160_s16] sm:$0xf] }
  0x13   : > { %v184_v6 = vpack.c.b16 %v183_v3, %v183_v3 }
  0x14   : > { %255 = vrot.lane.b32.xlu0 %v254_v5, %s468_s20  ;;  %287 = vrot.lane.b32.xlu2 %v254_v5, %s470_s22  ;;  %v249_v8 = vpack.c.b16 %v248_v7, %v248_v7 }
  0x15   : > { %185 = vrot.lane.b32.xlu1 %v184_v6, %s469_s21 }
  0x1c   : > { %250 = vrot.lane.b32.xlu0 %v249_v8, %s471_s23 }
  0x24   : > { %219 = vrot.lane.b32.xlu0 %v184_v6, %s472_s24 }
  0x6e   : > { %v288_v26 = vpop.permute.xlu2 %287 }
  0x6f   : > { %v293_v27 = vsel %vm224_vm2, %v288_v26, 0 }
  0x70   : > { %302 = vmatpush.bf16.msra.mxu3 %v293_v27 }
  0x86   : > { %v256_v9 = vpop.permute.xlu0 %255 }
  0x87   : > { %v186_v10 = vpop.permute.xlu1 %185  ;;  %v261_v12 = vsel %vm187_vm0, %v256_v9, 0 }
  0x88   : > { %v192_v11 = vsel %vm187_vm0, %v186_v10, 0  ;;  %270 = vmatpush.bf16.xpose.msra.mxu2 %v261_v12 }
  0x89   : > { %201 = vmatpush.bf16.xpose.msra.mxu0 %v192_v11 }
  0x8e   : > { %v251_v14 = vpop.permute.xlu0 %250 }
  0x8f   : > { %401 = vmatmul.msk.bf16.vlgmr.msra.gmra.mxu2 %vm187_vm0, %v251_v14 }
  0x90   : > { %399 = vmatmul.msk.bf16.vlgmr.msra.gmra.mxu0 %vm187_vm0, %v180_v13 }
  0x96   : > { %v220_v24 = vpop.permute.xlu0 %219 }
  0x97   : > { %v226_v25 = vsel %vm224_vm2, %v220_v24, 0 }
  0x98   : > { %235 = vmatpush.bf16.msra.mxu1 %v226_v25 }
 0x10d   : > { %v203_v16 = vpop.f32.mrf.mxu0 }
 0x10e   : > { %v204_v17 = vadd.f32 %v435_v15, %v203_v16 }
 0x110   : > { %v208_v18 = vsel %vm207_vm1, %v204_v17, -inf }
 0x111   : > { %209 = vmax.xlane.f32.xlu2 %v208_v18 }
 0x112   : > { %v272_v19 = vpop.f32.mrf.mxu2 }
 0x113   : > { %v273_v20 = vadd.f32 %v435_v15, %v272_v19 }
 0x115   : > { %v205_v21 = vpop.f32.mrf.mxu0  ;;  %v276_v22 = vsel %vm207_vm1, %v273_v20, -inf }
 0x116   : > { %277 = vmax.xlane.f32.xlu1 %v276_v22 }
 0x11a   : > { %v274_v23 = vpop.f32.mrf.mxu2 }
 0x184   : > { %v210_v28 = vpop.xlane.xlu2 %209 }
 0x185   : > { %v211_v29 = vsub.f32 %v204_v17, %v210_v28 }
 0x187   : > { %v212_v30 = vmul.f32 1.442695, %v211_v29 }
 0x189   : > { %436 = vpow2.f32 %v212_v30  ;;  %v278_v31 = vpop.xlane.xlu1 %277 }
 0x18a   : > { %v279_v32 = vsub.f32 %v273_v20, %v278_v31 }
 0x18c   : > { %v280_v33 = vmul.f32 1.442695, %v279_v32 }
 0x18e   : > { %438 = vpow2.f32 %v280_v33 }
 0x18f   : > { %v437_v34 = vpop.eup %436 }
 0x190   : > { %v218_v35 = vpack.c.bf16 %v437_v34, %v437_v34  ;;  %v214_v36 = vsel %vm207_vm1, %v437_v34, 0.0 }
 0x191   : > { %215 = vadd.xlane.f32.xlu2 %v214_v36 }
 0x192   : > { %400 = vmatmul.msk.bf16.vlgmr.msra.gmra.mxu1 %vm207_vm1, %v218_v35 }
 0x194   : > { %v439_v37 = vpop.eup %438 }
 0x195   : > { %v282_v38 = vsel %vm207_vm1, %v439_v37, 0.0  ;;  %v286_v39 = vpack.c.bf16 %v439_v37, %v439_v37 }
 0x196   : > { %283 = vadd.xlane.f32.xlu0 %v282_v38 }
 0x197   : > { %402 = vmatmul.msk.bf16.vlgmr.msra.gmra.mxu3 %vm207_vm1, %v286_v39 }
 0x204   : > { %v216_v40 = vpop.xlane.xlu2 %215 }
 0x205   : > { %440 = vrcp.f32 %v216_v40 }
 0x209   : > { %v284_v44 = vpop.xlane.xlu0 %283 }
 0x20a   : > { %442 = vrcp.f32 %v284_v44 }
 0x20b   : > { %v441_v41 = vpop.eup %440 }
 0x20f   : > { %v237_v42 = vpop.f32.mrf.mxu1 }
 0x210   : > { %v241_v43 = vmul.f32 %v441_v41, %v237_v42  ;;  %v443_v47 = vpop.eup %442 }
 0x212   : > { %v242_v45 = vpack.c.bf16 %v241_v43, %v241_v43 }
 0x214   : > { %244 = vst.msk [vmem:[%s168_s27] sm:$0xf] %vm243_vm3, %v242_v45 }
 0x217   : > { %v239_v46 = vpop.f32.mrf.mxu1 }
 0x21a   : > { %v304_v48 = vpop.f32.mrf.mxu3 }
 0x21b   : > { %v308_v49 = vmul.f32 %v443_v47, %v304_v48 }
 0x21d   : > { %v309_v50 = vpack.c.bf16 %v308_v49, %v308_v49 }
 0x21f   : > { %311 = vrot.lane.b32.xlu1 %v309_v50, %s473_s28 }
 0x222   : > { %v306_v51 = vpop.f32.mrf.mxu3 }
 0x291   : > { %v312_v52 = vpop.permute.xlu1 %311 }
 0x292   : > { %315 = vst.msk [vmem:[%s168_s27] sm:$0xf] %vm314_vm4, %v312_v52 }
 0x293 PF: > { %s12_s11 = sadd.s32 1, %s466_s11   ;;  %s542_s9 = smov %s462_s10 }
 0x294   : > { %p9_p5 = scmp.ge.s32.totalorder %s12_s11, 4   ;;  %s543_s10 = smov %s545_s12 }
 0x296   :  { %11 = sbr.rel (!%p9_p5) target bundleno = 2 (0x2), region = 62 }

// kernel: bert_classifier_forward.16
= control target key start
LH: loop header
LB: loop body
LE: loop exit
PB: predicated region body
PF: predicated region fallthrough
CT: control target
= control target key end

     0   :  { %vm51_vm0 = vcmask 261120   ;;  %v177_v15 = vmov 32.0   ;;  %vm140_vm6 = vcmask 257024   ;;  %s245_s1 = inlined_call_operand.vmem [shape: bf16[32,32], index: 1, kind: input, shape index: {}]   ;;  %s246_s2 = inlined_call_operand.vmem [shape: f32[1,32], index: 2, kind: input, shape index: {}]   ;;  %s247_s0 = inlined_call_operand.vmem [shape: bf16[16,32], index: 0, kind: input, shape index: {}]   ;;  %s248_s3 = inlined_call_operand.vmem [shape: bf16[16,32], index: 3, kind: input, shape index: {}]   ;;  %s249_s4 = inlined_call_operand.vmem [shape: f32[1,32], index: 4, kind: input, shape index: {}]   ;;  %s250_s5 = inlined_call_operand.vmem [shape: f32[1,32], index: 5, kind: input, shape index: {}]   ;;  %s251_s6 = inlined_call_operand.vmem [shape: bf16[16,32], index: 6, kind: output, shape index: {}]  }
   0x1   :  { %v162_v0 = vld [vmem:[%s245_s1 + $0x8] sm:$0xff]  ;;  %v161_v1 = vld [vmem:[%s245_s1] sm:$0xff]  ;;  %171 = vrcp.f32 %v177_v15 }
   0x2   :  { %61 = vmatpush.bf16.msra.mxu0 %v162_v0  ;;  %v160_v2 = vld [vmem:[%s247_s0] sm:$0xff] }
   0x3   :  { %v164_v3 = vld [vmem:[%s248_s3] sm:$0xff]  }
   0x4   :  { %v168_v4 = vld [vmem:[%s246_s2] ss:$0 sm:$0xff]  ;;  %v165_v5 = vunpack.c.l.bf16 %v164_v3  ;;  %v166_v10 = vunpack.c.h.bf16 %v164_v3 }
   0x5   :  { %v169_v46 = vld [vmem:[%s249_s4] ss:$0 sm:$0xff] }
   0x6   :  { %62 = vmatpush.bf16.msra.mxu0 %v161_v1  ;;  %v170_v49 = vld [vmem:[%s250_s5] ss:$0 sm:$0xff] }
   0x7   :  { %v172_v16 = vpop.eup %171 }
   0x8   :  { %v82_v17 = vmul.f32 32.0, %v172_v16  ;;  %vm86_vm1 = vweird.f32 %v172_v16 }
   0x9   :  { %159 = vmatmul.msk.bf16.vlgmr.msra.gmra.mxu0 %vm51_vm0, %v160_v2 }
   0xa   :  { %v83_v18 = vsub.f32 1.0, %v82_v17 }
   0xc   :  { %v84_v19 = vmul.f32 %v172_v16, %v83_v18 }
   0xe   :  { %v85_v20 = vadd.f32 %v172_v16, %v84_v19 }
  0x10   :  { %v87_v21 = vsel %vm86_vm1, %v172_v16, %v85_v20 }
  0x86   :  { %v64_v6 = vpop.f32.mrf.mxu0 }
  0x87   :  { %v65_v7 = vadd.f32 %v168_v4, %v64_v6 }
  0x89   :  { %v73_v8 = vadd.f32 %v165_v5, %v65_v7 }
  0x8b   :  { %v75_v9 = vsel %vm51_vm0, %v73_v8, 0.0 }
  0x8c   :  { %76 = vadd.xlane.f32.xlu0 %v75_v9 }
  0x8e   :  { %v66_v11 = vpop.f32.mrf.mxu0 }
  0x8f   :  { %v67_v12 = vadd.f32 %v168_v4, %v66_v11 }
  0x91   :  { %v74_v13 = vadd.f32 %v166_v10, %v67_v12 }
  0x93   :  { %v78_v14 = vsel %vm51_vm0, %v74_v13, 0.0 }
  0x94   :  { %79 = vadd.xlane.f32.xlu0 %v78_v14 }
  0xff   :  { %v77_v22 = vpop.xlane.xlu0 %76 }
 0x100   :  { %v88_v23 = vmul.f32 %v87_v21, %v77_v22 }
 0x102   :  { %v90_v24 = vsub.f32 %v73_v8, %v88_v23 }
 0x104   :  { %v92_v25 = vmul.f32 %v90_v24, %v90_v24 }
 0x106   :  { %v94_v26 = vsel %vm51_vm0, %v92_v25, 0.0 }
 0x107   :  { %95 = vadd.xlane.f32.xlu1 %v94_v26  ;;  %v80_v27 = vpop.xlane.xlu0 %79 }
 0x108   :  { %v89_v28 = vmul.f32 %v87_v21, %v80_v27 }
 0x10a   :  { %v91_v29 = vsub.f32 %v74_v13, %v89_v28 }
 0x10c   :  { %v93_v30 = vmul.f32 %v91_v29, %v91_v29 }
 0x10e   :  { %v97_v31 = vsel %vm51_vm0, %v93_v30, 0.0 }
 0x10f   :  { %98 = vadd.xlane.f32.xlu1 %v97_v31 }
 0x17a   :  { %v96_v32 = vpop.xlane.xlu1 %95 }
 0x17b   :  { %v100_v33 = vmul.f32 %v96_v32, %v87_v21 }
 0x17d   :  { %v102_v34 = vadd.f32 1e-12, %v100_v33 }
 0x17f   :  { %173 = vrsqrt.f32 %v102_v34  ;;  %vm110_vm3 = vweird.f32 %v102_v34 }
 0x182   :  { %v99_v35 = vpop.xlane.xlu1 %98 }
 0x183   :  { %v101_v36 = vmul.f32 %v99_v35, %v87_v21 }
 0x185   :  { %v174_v37 = vpop.eup %173  ;;  %v103_v38 = vadd.f32 1e-12, %v101_v36 }
 0x186   :  { %v105_v39 = vmul.f32 %v174_v37, %v102_v34  ;;  %vm111_vm2 = vweird.f32 %v174_v37 }
 0x187   :  { %175 = vrsqrt.f32 %v103_v38  ;;  %vm112_vm4 = vmor %vm110_vm3, %vm111_vm2  ;;  %vm120_vm7 = vweird.f32 %v103_v38 }
 0x188   :  { %v106_v40 = vmul.f32 %v174_v37, %v105_v39 }
 0x18a   :  { %v107_v41 = vmul.f32 0.5, %v106_v40 }
 0x18c   :  { %v108_v42 = vsub.f32 1.5, %v107_v41 }
 0x18d   :  { %v176_v43 = vpop.eup %175 }
 0x18e   :  { %v109_v44 = vmul.f32 %v174_v37, %v108_v42  ;;  %v115_v45 = vmul.f32 %v176_v43, %v103_v38  ;;  %vm121_vm5 = vweird.f32 %v176_v43 }
 0x18f   :  { %vm122_vm8 = vmor %vm120_vm7, %vm121_vm5 }
 0x190   :  { %v113_v47 = vsel %vm112_vm4, %v174_v37, %v109_v44  ;;  %v116_v48 = vmul.f32 %v176_v43, %v115_v45 }
 0x191   :  { %v124_v50 = vmul.f32 %v113_v47, %v90_v24 }
 0x192   :  { %v117_v51 = vmul.f32 0.5, %v116_v48 }
 0x193   :  { %v130_v52 = vmul.f32 %v169_v46, %v124_v50 }
 0x194   :  { %v118_v53 = vsub.f32 1.5, %v117_v51 }
 0x195   :  { %v136_v54 = vadd.f32 %v170_v49, %v130_v52 }
 0x196   :  { %v119_v55 = vmul.f32 %v176_v43, %v118_v53 }
 0x197   :  { %v138_v56 = vpack.c.bf16 %v136_v54, %v136_v54 }
 0x198   :  { %v123_v57 = vsel %vm122_vm8, %v176_v43, %v119_v55 }
 0x199   :  { %141 = vst.msk [vmem:[%s251_s6] sm:$0xf] %vm140_vm6, %v138_v56  ;;  %v125_v58 = vmul.f32 %v123_v57, %v91_v29 }
 0x19b   :  { %v131_v59 = vmul.f32 %v169_v46, %v125_v58 }
 0x19d   :  { %v137_v60 = vadd.f32 %v170_v49, %v131_v59 }
 0x19f   :  { %v139_v61 = vpack.c.bf16 %v137_v60, %v137_v60 }
 0x1a1   :  { %142 = vst.msk [vmem:[%s251_s6 + $0x4] sm:$0xf] %vm140_vm6, %v139_v61 }

// kernel: bert_classifier_forward.17
= control target key start
LH: loop header
LB: loop body
LE: loop exit
PB: predicated region body
PF: predicated region fallthrough
CT: control target
= control target key end

     0   :  { %vm42_vm0 = vcmask 261120   ;;  %vm80_vm1 = vcmask 519168   ;;  %s146_s1 = inlined_call_operand.vmem [shape: bf16[32,64], index: 1, kind: input, shape index: {}]   ;;  %s147_s2 = inlined_call_operand.vmem [shape: f32[1,64], index: 2, kind: input, shape index: {}]   ;;  %s148_s0 = inlined_call_operand.vmem [shape: bf16[16,32], index: 0, kind: input, shape index: {}]   ;;  %s149_s3 = inlined_call_operand.vmem [shape: bf16[16,64], index: 3, kind: output, shape index: {}]  }
   0x1   :  { %v102_v0 = vld [vmem:[%s146_s1 + $0x8] sm:$0xff]  ;;  %v101_v1 = vld [vmem:[%s146_s1] sm:$0xff] }
   0x2   :  { %52 = vmatpush.bf16.msra.mxu0 %v102_v0  ;;  %v100_v2 = vld [vmem:[%s148_s0] sm:$0xff] }
   0x3   :  { %v103_v3 = vld [vmem:[%s147_s2] ss:$0 sm:$0xff] }
   0x6   :  { %53 = vmatpush.bf16.msra.mxu0 %v101_v1 }
   0x9   :  { %99 = vmatmul.msk.bf16.vlgmr.msra.gmra.mxu0 %vm42_vm0, %v100_v2 }
  0x86   :  { %v55_v4 = vpop.f32.mrf.mxu0 }
  0x87   :  { %v56_v5 = vadd.f32 %v103_v3, %v55_v4 }
  0x89   :  { %v60_v6 = vmul.f32 %v56_v5, %v56_v5 }
  0x8b   :  { %v62_v7 = vmul.f32 %v60_v6, %v56_v5 }
  0x8d   :  { %v64_v8 = vmul.f32 0.044715, %v62_v7 }
  0x8e   :  { %v57_v9 = vpop.f32.mrf.mxu0 }
  0x8f   :  { %v66_v10 = vadd.f32 %v64_v8, %v56_v5  ;;  %v58_v11 = vadd.f32 %v103_v3, %v57_v9 }
  0x91   :  { %v68_v12 = vmul.f32 0.7978846, %v66_v10  ;;  %v61_v13 = vmul.f32 %v58_v11, %v58_v11 }
  0x93   :  { %104 = vtanh.f32 %v68_v12  ;;  %v63_v14 = vmul.f32 %v61_v13, %v58_v11 }
  0x95   :  { %v65_v15 = vmul.f32 0.044715, %v63_v14 }
  0x97   :  { %v67_v16 = vadd.f32 %v65_v15, %v58_v11 }
  0x99   :  { %v105_v17 = vpop.eup %104  ;;  %v69_v18 = vmul.f32 0.7978846, %v67_v16 }
  0x9a   :  { %v72_v19 = vadd.f32 1.0, %v105_v17 }
  0x9b   :  { %106 = vtanh.f32 %v69_v18 }
  0x9c   :  { %v74_v20 = vmul.f32 0.5, %v72_v19 }
  0x9e   :  { %v76_v21 = vmul.f32 %v74_v20, %v56_v5 }
  0xa0   :  { %v78_v22 = vpack.c.bf16 %v76_v21, %v76_v21 }
  0xa1   :  { %v107_v23 = vpop.eup %106 }
  0xa2   :  { %81 = vst.msk [vmem:[%s149_s3] sm:$0xf] %vm80_vm1, %v78_v22  ;;  %v73_v24 = vadd.f32 1.0, %v107_v23 }
  0xa4   :  { %v75_v25 = vmul.f32 0.5, %v73_v24 }
  0xa6   :  { %v77_v26 = vmul.f32 %v75_v25, %v58_v11 }
  0xa8   :  { %v79_v27 = vpack.c.bf16 %v77_v26, %v77_v26 }
  0xaa   :  { %82 = vst.msk [vmem:[%s149_s3 + $0x4] sm:$0xf] %vm80_vm1, %v79_v27 }

// kernel: bert_classifier_forward.18
= control target key start
LH: loop header
LB: loop body
LE: loop exit
PB: predicated region body
PF: predicated region fallthrough
CT: control target
= control target key end

     0   :  { %vm67_vm0 = vcmask 523264   ;;  %vm91_vm1 = vcmask 261120   ;;  %v204_v17 = vmov 32.0   ;;  %vm157_vm7 = vcmask 257024   ;;  %s277_s1 = inlined_call_operand.vmem [shape: bf16[64,32], index: 1, kind: input, shape index: {}]   ;;  %s278_s2 = inlined_call_operand.vmem [shape: f32[1,32], index: 2, kind: input, shape index: {}]   ;;  %s279_s0 = inlined_call_operand.vmem [shape: bf16[16,64], index: 0, kind: input, shape index: {}]   ;;  %s280_s3 = inlined_call_operand.vmem [shape: bf16[16,32], index: 3, kind: input, shape index: {}]   ;;  %s281_s4 = inlined_call_operand.vmem [shape: f32[1,32], index: 4, kind: input, shape index: {}]   ;;  %s282_s5 = inlined_call_operand.vmem [shape: f32[1,32], index: 5, kind: input, shape index: {}]   ;;  %s283_s6 = inlined_call_operand.vmem [shape: bf16[16,32], index: 6, kind: output, shape index: {}]  }
   0x1   :  { %v189_v0 = vld [vmem:[%s277_s1 + $0x18] sm:$0xff]  ;;  %v188_v1 = vld [vmem:[%s277_s1 + $0x10] sm:$0xff]  ;;  %v187_v2 = vld [vmem:[%s277_s1 + $0x8] sm:$0xff]  ;;  %198 = vrcp.f32 %v204_v17 }
   0x2   :  { %75 = vmatpush.bf16.msra.mxu0 %v189_v0  ;;  %v186_v3 = vld [vmem:[%s277_s1] sm:$0xff] }
   0x3   :  { %v185_v4 = vld [vmem:[%s279_s0] sm:$0xff] }
   0x4   :  { %v191_v5 = vld [vmem:[%s280_s3] sm:$0xff]  }
   0x5   :  { %v195_v6 = vld [vmem:[%s278_s2] ss:$0 sm:$0xff]  ;;  %v192_v7 = vunpack.c.l.bf16 %v191_v5  ;;  %v193_v12 = vunpack.c.h.bf16 %v191_v5 }
   0x6   :  { %76 = vmatpush.bf16.msra.mxu0 %v188_v1  ;;  %v196_v48 = vld [vmem:[%s281_s4] ss:$0 sm:$0xff] }
   0x7   :  { %v199_v18 = vpop.eup %198  ;;  %v197_v51 = vld [vmem:[%s282_s5] ss:$0 sm:$0xff] }
   0x8   :  { %v99_v19 = vmul.f32 32.0, %v199_v18  ;;  %vm103_vm2 = vweird.f32 %v199_v18 }
   0xa   :  { %77 = vmatpush.bf16.msra.mxu0 %v187_v2  ;;  %v100_v20 = vsub.f32 1.0, %v99_v19 }
   0xc   :  { %v101_v21 = vmul.f32 %v199_v18, %v100_v20 }
   0xe   :  { %78 = vmatpush.bf16.msra.mxu0 %v186_v3  ;;  %v102_v22 = vadd.f32 %v199_v18, %v101_v21 }
  0x10   :  { %v104_v23 = vsel %vm103_vm2, %v199_v18, %v102_v22 }
  0x11   :  { %184 = vmatmul.msk.bf16.vlgmr.msra.gmra.mxu0 %vm67_vm0, %v185_v4 }
  0x8e   :  { %v80_v8 = vpop.f32.mrf.mxu0 }
  0x8f   :  { %v81_v9 = vadd.f32 %v195_v6, %v80_v8 }
  0x91   :  { %v89_v10 = vadd.f32 %v192_v7, %v81_v9 }
  0x93   :  { %v92_v11 = vsel %vm91_vm1, %v89_v10, 0.0 }
  0x94   :  { %93 = vadd.xlane.f32.xlu0 %v92_v11 }
  0x96   :  { %v82_v13 = vpop.f32.mrf.mxu0 }
  0x97   :  { %v83_v14 = vadd.f32 %v195_v6, %v82_v13 }
  0x99   :  { %v90_v15 = vadd.f32 %v193_v12, %v83_v14 }
  0x9b   :  { %v95_v16 = vsel %vm91_vm1, %v90_v15, 0.0 }
  0x9c   :  { %96 = vadd.xlane.f32.xlu0 %v95_v16 }
 0x107   :  { %v94_v24 = vpop.xlane.xlu0 %93 }
 0x108   :  { %v105_v25 = vmul.f32 %v104_v23, %v94_v24 }
 0x10a   :  { %v107_v26 = vsub.f32 %v89_v10, %v105_v25 }
 0x10c   :  { %v109_v27 = vmul.f32 %v107_v26, %v107_v26 }
 0x10e   :  { %v111_v28 = vsel %vm91_vm1, %v109_v27, 0.0 }
 0x10f   :  { %112 = vadd.xlane.f32.xlu1 %v111_v28  ;;  %v97_v29 = vpop.xlane.xlu0 %96 }
 0x110   :  { %v106_v30 = vmul.f32 %v104_v23, %v97_v29 }
 0x112   :  { %v108_v31 = vsub.f32 %v90_v15, %v106_v30 }
 0x114   :  { %v110_v32 = vmul.f32 %v108_v31, %v108_v31 }
 0x116   :  { %v114_v33 = vsel %vm91_vm1, %v110_v32, 0.0 }
 0x117   :  { %115 = vadd.xlane.f32.xlu1 %v114_v33 }
 0x182   :  { %v113_v34 = vpop.xlane.xlu1 %112 }
 0x183   :  { %v117_v35 = vmul.f32 %v113_v34, %v104_v23 }
 0x185   :  { %v119_v36 = vadd.f32 1e-12, %v117_v35 }
 0x187   :  { %200 = vrsqrt.f32 %v119_v36  ;;  %vm127_vm4 = vweird.f32 %v119_v36 }
 0x18a   :  { %v116_v37 = vpop.xlane.xlu1 %115 }
 0x18b   :  { %v118_v38 = vmul.f32 %v116_v37, %v104_v23 }
 0x18d   :  { %v201_v39 = vpop.eup %200  ;;  %v120_v40 = vadd.f32 1e-12, %v118_v38 }
 0x18e   :  { %v122_v41 = vmul.f32 %v201_v39, %v119_v36  ;;  %vm128_vm3 = vweird.f32 %v201_v39 }
 0x18f   :  { %202 = vrsqrt.f32 %v120_v40  ;;  %vm129_vm5 = vmor %vm127_vm4, %vm128_vm3  ;;  %vm137_vm8 = vweird.f32 %v120_v40 }
 0x190   :  { %v123_v42 = vmul.f32 %v201_v39, %v122_v41 }
 0x192   :  { %v124_v43 = vmul.f32 0.5, %v123_v42 }
 0x194   :  { %v125_v44 = vsub.f32 1.5, %v124_v43 }
 0x195   :  { %v203_v45 = vpop.eup %202 }
 0x196   :  { %v126_v46 = vmul.f32 %v201_v39, %v125_v44  ;;  %v132_v47 = vmul.f32 %v203_v45, %v120_v40  ;;  %vm138_vm6 = vweird.f32 %v203_v45 }
 0x197   :  { %vm139_vm9 = vmor %vm137_vm8, %vm138_vm6 }
 0x198   :  { %v130_v49 = vsel %vm129_vm5, %v201_v39, %v126_v46  ;;  %v133_v50 = vmul.f32 %v203_v45, %v132_v47 }
 0x199   :  { %v141_v52 = vmul.f32 %v130_v49, %v107_v26 }
 0x19a   :  { %v134_v53 = vmul.f32 0.5, %v133_v50 }
 0x19b   :  { %v147_v54 = vmul.f32 %v196_v48, %v141_v52 }
 0x19c   :  { %v135_v55 = vsub.f32 1.5, %v134_v53 }
 0x19d   :  { %v153_v56 = vadd.f32 %v197_v51, %v147_v54 }
 0x19e   :  { %v136_v57 = vmul.f32 %v203_v45, %v135_v55 }
 0x19f   :  { %v155_v58 = vpack.c.bf16 %v153_v56, %v153_v56 }
 0x1a0   :  { %v140_v59 = vsel %vm139_vm9, %v203_v45, %v136_v57 }
 0x1a1   :  { %158 = vst.msk [vmem:[%s283_s6] sm:$0xf] %vm157_vm7, %v155_v58  ;;  %v142_v60 = vmul.f32 %v140_v59, %v108_v31 }
 0x1a3   :  { %v148_v61 = vmul.f32 %v196_v48, %v142_v60 }
 0x1a5   :  { %v154_v62 = vadd.f32 %v197_v51, %v148_v61 }
 0x1a7   :  { %v156_v63 = vpack.c.bf16 %v154_v62, %v154_v62 }
 0x1a9   :  { %159 = vst.msk [vmem:[%s283_s6 + $0x4] sm:$0xf] %vm157_vm7, %v156_v63 }

// kernel: bert_classifier_forward.24
= control target key start
LH: loop header
LB: loop body
LE: loop exit
PB: predicated region body
PF: predicated region fallthrough
CT: control target
= control target key end

     0   :  { %vm36_vm0 = vcmask 261120   ;;  %vm55_vm1 = vcmask 253952   ;;  %s110_s1 = inlined_call_operand.vmem [shape: bf16[32,32], index: 1, kind: input, shape index: {}]   ;;  %s111_s2 = inlined_call_operand.vmem [shape: f32[1,32], index: 2, kind: input, shape index: {}]   ;;  %s112_s0 = inlined_call_operand.vmem [shape: bf16[2,32], index: 0, kind: input, shape index: {}]   ;;  %s113_s3 = inlined_call_operand.vmem [shape: bf16[2,32], index: 3, kind: output, shape index: {}]  }
   0x1   :  { %v71_v0 = vld [vmem:[%s110_s1 + $0x8] sm:$0xff]  ;;  %v70_v1 = vld [vmem:[%s110_s1] sm:$0xff] }
   0x2   :  { %46 = vmatpush.bf16.msra.mxu0 %v71_v0  ;;  %v15_v2 = vld [vmem:[%s112_s0] sm:$0x1] }
   0x3   :  { %v72_v3 = vld [vmem:[%s111_s2] ss:$0 sm:$0xff] }
   0x6   :  { %47 = vmatpush.bf16.msra.mxu0 %v70_v1 }
   0x9   :  { %69 = vmatmul.msk.bf16.vlgmr.msra.gmra.mxu0 %vm36_vm0, %v15_v2 }
  0x86   :  { %v49_v4 = vpop.f32.mrf.mxu0 }
  0x87   :  { %v50_v5 = vadd.f32 %v72_v3, %v49_v4 }
  0x89   :  { %73 = vtanh.f32 %v50_v5 }
  0x8e   :  { %v51_v6 = vpop.f32.mrf.mxu0 }
  0x8f   :  { %v74_v7 = vpop.eup %73 }
  0x90   :  { %v54_v8 = vpack.c.bf16 %v74_v7, %v74_v7 }
  0x92   :  { %56 = vst.msk [vmem:[%s113_s3] sm:$0x1] %vm55_vm1, %v54_v8 }

// kernel: bert_classifier_forward.25
= control target key start
LH: loop header
LB: loop body
LE: loop exit
PB: predicated region body
PF: predicated region fallthrough
CT: control target
= control target key end

     0   :  { %s147_s0 = inlined_call_operand.vmem [shape: bf16[2,32], index: 0, kind: input, shape index: {}]   ;;  %s148_s1 = inlined_call_operand.vmem [shape: bf16[32,3], index: 1, kind: input, shape index: {}]   ;;  %s149_s2 = inlined_call_operand.vmem [shape: f32[1,3], index: 2, kind: input, shape index: {}]   ;;  %s150_s3 = inlined_call_operand.hbm [shape: f32[2,3], index: 3, kind: output, shape index: {}]  }
   0x1   :  { %v82_v0 = vld [vmem:[%s148_s1 + $0x8] sm:$0xff] }
   0x2   :  { %8 = vsyncpa [#allocation3], 0  ;;  %47 = vmatpush.bf16.msra.mxu0 %v82_v0  ;;  %v81_v1 = vld [vmem:[%s148_s1] sm:$0xff]  ;;  %vm37_vm0 = vcmask 261120   ;;  %s111_s20 = smov [#allocation2]   ;;  %s63_s24 = sshll.u32 %s150_s3, 4  ;;  %s64_s24 = int_to_ptr.hbm [resolvable:$true] %s63_s24 }
   0x3   :  { %v16_v2 = vld [vmem:[%s147_s0] sm:$0x1]  ;;  %s61_s21 = sshll.u32 %s111_s20, 4  ;;  %vm54_vm1 = vcmask 17408   ;;  %s62_s21 = int_to_ptr.vmem [resolvable:$true] %s61_s21 }
   0x4   :  { %v84_v3 = vld [vmem:[%s149_s2] ss:$0 sm:$0xff] }
   0x6   :  { %48 = vmatpush.bf16.msra.mxu0 %v81_v1 }
   0x9   :  { %80 = vmatmul.msk.bf16.vlgmr.msra.gmra.mxu0 %vm37_vm0, %v16_v2 }
  0x86   :  { %v50_v4 = vpop.f32.mrf.mxu0 }
  0x87   :  { %v51_v5 = vadd.f32 %v84_v3, %v50_v4 }
  0x89   :  { %55 = vst.msk [vmem:[#allocation2] sm:$0x3] %vm54_vm1, %v51_v5 }
  0x8a   :  { %66 = dma.vmem_to_hbm [thread:$0]  %s62_s21, 32, %s64_s24, [#allocation3]  }
  0x8e   :  { %v52_v6 = vpop.f32.mrf.mxu0 }
  0x8f   :  { %109 = dma.done.wait [#allocation3], 32  }
  0x90   :  { %110 = vsyncadd [#allocation3], 4294967264 }
  0x91   :  { %71 = vsyncpa [#allocation3], 1 }

</bundles_post_ra>
